<compile_context>
chip_gen: v7x
topology: tpu7x:2x2x1
jax: 0.10.0
libtpu: 0.0.40
codegen_flags: <defaults>
</compile_context>

<pallas_src>
import math

import jax
import jax.numpy as jnp
from jax import lax
from jax.experimental import pallas as pl
from jax.experimental.pallas import tpu as pltpu

EMBED_DIM = 128
NUM_HEADS = 4
HEAD_DIM = EMBED_DIM // NUM_HEADS
LN_EPS = 1e-6          # module uses nn.LayerNorm(..., eps=1e-06)


def _layernorm(x, gamma, beta):
    mu = jnp.mean(x, axis=-1, keepdims=True)
    xc = x - mu
    var = jnp.mean(xc * xc, axis=-1, keepdims=True)
    return xc * lax.rsqrt(var + LN_EPS) * gamma + beta


def self_attention_kernel(x_ref, wqkv_ref, bqkv_ref, wout_ref, par_ref, o_ref):
    # x_ref / o_ref: (Bt, S, E) block covering Bt batch elements.
    Bt, S, E = x_ref.shape
    M = Bt * S
    Dh = HEAD_DIM

    params = par_ref[...]                 # (8, E) packed small params (f32)
    g1, b1 = params[0:1], params[1:2]
    g2, b2 = params[2:3], params[3:4]
    b_out = params[4:5]

    # Flatten batch into the row (sublane) dim; E=128 stays the lane dim.
    x = x_ref[...].reshape(M, E).astype(jnp.float32)

    # --- LayerNorm 1 (f32) ---
    xn = _layernorm(x, g1, b1)

    # --- QKV projection: one lane-dense bf16 MXU matmul, (M, 3E) output.
    #     (softmax scale pre-folded into the Q columns of the weight/bias) ---
    qkv = jnp.dot(xn.astype(jnp.bfloat16), wqkv_ref[...],
                  preferred_element_type=jnp.float32) + bqkv_ref[...]

    qkv3 = qkv.reshape(Bt, S, 3 * E)

    # --- Multi-head attention, batched over Bt per head; head outputs are
    #     accumulated straight through their w_out row-slice (no concat). ---
    acc = jnp.zeros((M, E), jnp.float32)
    for h in range(NUM_HEADS):
        qh = qkv3[:, :, h * Dh:(h + 1) * Dh].astype(jnp.bfloat16)          # (Bt,S,Dh)
        kh = qkv3[:, :, E + h * Dh:E + (h + 1) * Dh].astype(jnp.bfloat16)
        vh = qkv3[:, :, 2 * E + h * Dh:2 * E + (h + 1) * Dh].astype(jnp.bfloat16)

        s = jnp.einsum('bqd,bkd->bqk', qh, kh,
                       preferred_element_type=jnp.float32)                 # (Bt,S,S)
        s = s - jnp.max(s, axis=-1, keepdims=True)
        p = jnp.exp(s)
        p = p * pl.reciprocal(jnp.sum(p, axis=-1, keepdims=True), approx=True)

        oh = jnp.einsum('bqk,bkd->bqd', p.astype(jnp.bfloat16), vh,
                        preferred_element_type=jnp.float32)                # (Bt,S,Dh)
        acc = acc + jnp.dot(oh.reshape(M, Dh).astype(jnp.bfloat16),
                            wout_ref[h * Dh:(h + 1) * Dh, :],
                            preferred_element_type=jnp.float32)
    # TODO(synk): for large S, switch to a flash-style KV-tiled inner loop
    # (online softmax) instead of materializing (Bt, S, S) scores per head;
    # mandatory on v7x's 64 MiB VMEM around S ~ 2k.

    # --- out bias + residual + LayerNorm 2 (f32) ---
    out = _layernorm(acc + b_out + x, g2, b2)
    o_ref[...] = out.reshape(Bt, S, E).astype(o_ref.dtype)


def _choose_block_batch(batch, seq):
    """Batch-tile so each step feeds the MXU ~256+ rows, but keep >=2 grid
    steps (when batch allows) so v7x's 2 TensorCores both get work."""
    target = max(1, -(-256 // seq))                 # ceil(256 / seq)
    cap = batch if batch < 2 else max(1, batch // 2)
    cap = min(cap, target)
    best = 1
    for cand in range(1, batch + 1):
        if cand <= cap and batch % cand == 0:
            best = cand
    return best


def simplified_self_attention(x, w_qkv, b_qkv, w_out, b_out, g1, bt1, g2, bt2):
    """x: (B, S, E).  Weights in (in, out) layout (transpose of nn.Linear.weight):
    w_qkv (E, 3E), w_out (E, E)."""
    B, S, E = x.shape
    assert E == EMBED_DIM
    H, Dh = NUM_HEADS, HEAD_DIM

    Bt = _choose_block_batch(B, S)
    nb = B // Bt

    # Fold the 1/sqrt(Dh) softmax scale into the Q columns (free, trace time),
    # and cast the matmul weights to bf16 once here (MXU-native operands).
    scale = float(Dh) ** -0.5
    col_scale = jnp.concatenate(
        [jnp.full((E,), scale, jnp.float32), jnp.ones((2 * E,), jnp.float32)])
    w_qkv_bf = (w_qkv.astype(jnp.float32) * col_scale[None, :]).astype(jnp.bfloat16)
    b_qkv_s = (b_qkv.astype(jnp.float32) * col_scale).reshape(1, 3 * E)
    w_out_bf = w_out.astype(jnp.bfloat16)

    # Pack the six (E,)-sized params into one (8, E) tile -> a single DMA.
    params = jnp.zeros((8, E), jnp.float32)
    for row, arr in enumerate((g1, bt1, g2, bt2, b_out)):
        params = params.at[row].set(arr.astype(jnp.float32))

    # Advisory cost estimate for XLA's scheduler.
    flops = (2 * B * S * E * 3 * E           # QKV projection
             + 4 * B * H * S * S * Dh        # scores + p@v
             + 2 * B * S * E * E)            # out projection
    transcendentals = B * H * S * S          # exp in softmax
    bytes_accessed = (2 * B * S * E * 4      # x in + out (f32)
                      + (E * 3 * E + E * E) * 2   # bf16 weights
                      + (8 * E + 3 * E) * 4)      # packed params + qkv bias

    # VMEM budget: double-buffered activation blocks + resident weights +
    # in-kernel f32 intermediates (xn, qkv, acc, scores).
    rows = Bt * S
    working = (4 * Bt * S * E * 4                       # in/out blocks, 2 bufs each
               + 2 * (E * 3 * E + E * E) * 2            # bf16 weights, 2 bufs
               + rows * 8 * E * 4                       # flat f32 intermediates
               + 2 * Bt * S * S * 4)                    # score / prob tiles
    vmem_limit = int(min(max(2 * working, 32 * 1024 * 1024), 64 * 1024 * 1024))

    const2 = lambda b: (0, 0)
    return pl.pallas_call(
        self_attention_kernel,
        out_shape=jax.ShapeDtypeStruct((B, S, E), x.dtype),
        grid=(nb,),
        in_specs=[
            pl.BlockSpec((Bt, S, E), lambda b: (b, 0, 0)),   # x (Bt batches / step)
            pl.BlockSpec((E, 3 * E), const2),                # qkv weight (bf16, scaled)
            pl.BlockSpec((1, 3 * E), const2),                # qkv bias   (f32, scaled)
            pl.BlockSpec((E, E), const2),                    # out weight (bf16)
            pl.BlockSpec((8, E), const2),                    # packed g1,b1,g2,b2,b_out
        ],
        out_specs=pl.BlockSpec((Bt, S, E), lambda b: (b, 0, 0)),
        compiler_params=pltpu.CompilerParams(
            dimension_semantics=("parallel",),
            vmem_limit_bytes=vmem_limit),
        cost_estimate=pl.CostEstimate(flops=int(flops),
                                      transcendentals=int(transcendentals),
                                      bytes_accessed=int(bytes_accessed)),
    )(x, w_qkv_bf, b_qkv_s, w_out_bf, params)


def simplified_self_attention_ref(x, w_qkv, b_qkv, w_out, b_out,
                                  g1, bt1, g2, bt2):
    """Pure-JAX f32 reference mirroring the PyTorch forward."""
    B, S, E = x.shape
    H, Dh = NUM_HEADS, HEAD_DIM

    def ln(y, g, b):
        mu = jnp.mean(y, axis=-1, keepdims=True)
        var = jnp.mean((y - mu) ** 2, axis=-1, keepdims=True)
        return (y - mu) / jnp.sqrt(var + LN_EPS) * g + b

    xn = ln(x, g1, bt1)
    qkv = jnp.einsum('bse,ef->bsf', xn, w_qkv,
                     precision=lax.Precision.HIGHEST) + b_qkv
    qkv = qkv.reshape(B, S, 3, H, Dh).transpose(2, 0, 3, 1, 4)
    q, k, v = qkv[0], qkv[1], qkv[2]                        # (B, H, S, Dh)
    attn = jnp.einsum('bhqd,bhkd->bhqk', q, k,
                      precision=lax.Precision.HIGHEST) * (Dh ** -0.5)
    attn = jax.nn.softmax(attn, axis=-1)
    out = jnp.einsum('bhqk,bhkd->bhqd', attn, v,
                     precision=lax.Precision.HIGHEST)
    out = out.transpose(0, 2, 1, 3).reshape(B, S, E)
    out = jnp.einsum('bse,ef->bsf', out, w_out,
                     precision=lax.Precision.HIGHEST) + b_out
    return ln(out + x, g2, bt2)


if __name__ == "__main__":
    key = jax.random.PRNGKey(0)
    ks = jax.random.split(key, 9)

    B, S, E = 8, 16, EMBED_DIM
    x = jax.random.normal(ks[0], (B, S, E), dtype=jnp.float32)

    # nn.Linear-style parameters stored as (in, out) (= PyTorch weight transposed).
    bw = 1.0 / math.sqrt(E)
    w_qkv = jax.random.uniform(ks[1], (E, 3 * E), minval=-bw, maxval=bw,
                               dtype=jnp.float32)
    b_qkv = jax.random.uniform(ks[2], (3 * E,), minval=-bw, maxval=bw,
                               dtype=jnp.float32)
    w_out = jax.random.uniform(ks[3], (E, E), minval=-bw, maxval=bw,
                               dtype=jnp.float32)
    b_out = jax.random.uniform(ks[4], (E,), minval=-bw, maxval=bw,
                               dtype=jnp.float32)
    # LayerNorm affine params (perturbed from identity so they are exercised).
    g1 = 1.0 + 0.1 * jax.random.normal(ks[5], (E,), dtype=jnp.float32)
    bt1 = 0.1 * jax.random.normal(ks[6], (E,), dtype=jnp.float32)
    g2 = 1.0 + 0.1 * jax.random.normal(ks[7], (E,), dtype=jnp.float32)
    bt2 = 0.1 * jax.random.normal(ks[8], (E,), dtype=jnp.float32)

    out = jax.block_until_ready(
        simplified_self_attention(x, w_qkv, b_qkv, w_out, b_out,
                                  g1, bt1, g2, bt2))
    ref = jax.block_until_ready(
        simplified_self_attention_ref(x, w_qkv, b_qkv, w_out, b_out,
                                      g1, bt1, g2, bt2))

    assert out.shape == (B, S, E)
    max_err = float(jnp.max(jnp.abs(out - ref)))
    # Tolerance sized for bf16 MXU operands (~2^-9 relative per matmul input)
    # against an f32 HIGHEST-precision reference.
    assert jnp.allclose(out, ref, atol=3e-2, rtol=3e-2), f"max err {max_err}"
    print("KERNEL_OK")
</pallas_src>

<mosaic_0001>
module attributes {stable_mosaic.version = 11 : i64} {
  func.func @self_attention_kernel(%arg0: i32, %arg1: memref<4x16x128xf32, #tpu.memory_space<vmem>>, %arg2: memref<128x384xbf16, #tpu.memory_space<vmem>>, %arg3: memref<1x384xf32, #tpu.memory_space<vmem>>, %arg4: memref<128x128xbf16, #tpu.memory_space<vmem>>, %arg5: memref<8x128xf32, #tpu.memory_space<vmem>>, %arg6: memref<4x16x128xf32, #tpu.memory_space<vmem>>) attributes {dimension_semantics = [#tpu.dimension_semantics<parallel>], iteration_bounds = array<i64: 2>, scalar_prefetch = 0 : i64, scratch_operands = 0 : i64, tpu.core_type = #tpu.core_type<tc>, window_params = [{transform_indices = @transform_0, window_bounds = array<i64: 4, 16, 128>}, {pipeline_mode = #tpu.pipeline_mode<synchronous>, transform_indices = @transform_1, window_bounds = array<i64: 128, 384>}, {pipeline_mode = #tpu.pipeline_mode<synchronous>, transform_indices = @transform_2, window_bounds = array<i64: 1, 384>}, {pipeline_mode = #tpu.pipeline_mode<synchronous>, transform_indices = @transform_3, window_bounds = array<i64: 128, 128>}, {pipeline_mode = #tpu.pipeline_mode<synchronous>, transform_indices = @transform_4, window_bounds = array<i64: 8, 128>}, {transform_indices = @transform_5, window_bounds = array<i64: 4, 16, 128>}]} {
    %c0 = arith.constant 0 : index
    %c0_0 = arith.constant 0 : index
    %0 = vector.load %arg5[%c0, %c0_0] : memref<8x128xf32, #tpu.memory_space<vmem>>, vector<8x128xf32>
    %1 = vector.extract_strided_slice %0 {offsets = [0, 0], sizes = [1, 128], strides = [1, 1]} : vector<8x128xf32> to vector<1x128xf32>
    %2 = vector.extract_strided_slice %0 {offsets = [1, 0], sizes = [1, 128], strides = [1, 1]} : vector<8x128xf32> to vector<1x128xf32>
    %3 = vector.extract_strided_slice %0 {offsets = [2, 0], sizes = [1, 128], strides = [1, 1]} : vector<8x128xf32> to vector<1x128xf32>
    %4 = vector.extract_strided_slice %0 {offsets = [3, 0], sizes = [1, 128], strides = [1, 1]} : vector<8x128xf32> to vector<1x128xf32>
    %5 = vector.extract_strided_slice %0 {offsets = [4, 0], sizes = [1, 128], strides = [1, 1]} : vector<8x128xf32> to vector<1x128xf32>
    %c0_1 = arith.constant 0 : index
    %c0_2 = arith.constant 0 : index
    %c0_3 = arith.constant 0 : index
    %6 = vector.load %arg1[%c0_1, %c0_2, %c0_3] : memref<4x16x128xf32, #tpu.memory_space<vmem>>, vector<4x16x128xf32>
    %7 = vector.shape_cast %6 : vector<4x16x128xf32> to vector<64x128xf32>
    %cst = arith.constant dense<0.000000e+00> : vector<64xf32>
    %8 = vector.multi_reduction <add>, %7, %cst [1] : vector<64x128xf32> to vector<64xf32>
    %9 = vector.shape_cast %8 : vector<64xf32> to vector<64x1xf32>
    %cst_4 = arith.constant 1.280000e+02 : f32
    %10 = vector.broadcast %cst_4 : f32 to vector<64x1xf32>
    %11 = arith.divf %9, %10 : vector<64x1xf32>
    %12 = vector.broadcast %11 : vector<64x1xf32> to vector<64x128xf32>
    %13 = arith.subf %7, %12 : vector<64x128xf32>
    %14 = arith.mulf %13, %13 : vector<64x128xf32>
    %cst_5 = arith.constant dense<0.000000e+00> : vector<64xf32>
    %15 = vector.multi_reduction <add>, %14, %cst_5 [1] : vector<64x128xf32> to vector<64xf32>
    %16 = vector.shape_cast %15 : vector<64xf32> to vector<64x1xf32>
    %cst_6 = arith.constant 1.280000e+02 : f32
    %17 = vector.broadcast %cst_6 : f32 to vector<64x1xf32>
    %18 = arith.divf %16, %17 : vector<64x1xf32>
    %cst_7 = arith.constant 9.99999997E-7 : f32
    %19 = vector.broadcast %cst_7 : f32 to vector<64x1xf32>
    %20 = arith.addf %18, %19 : vector<64x1xf32>
    %21 = math.rsqrt %20 : vector<64x1xf32>
    %22 = vector.broadcast %21 : vector<64x1xf32> to vector<64x128xf32>
    %23 = arith.mulf %13, %22 : vector<64x128xf32>
    %24 = vector.broadcast %1 : vector<1x128xf32> to vector<64x128xf32>
    %25 = arith.mulf %23, %24 : vector<64x128xf32>
    %26 = vector.broadcast %2 : vector<1x128xf32> to vector<64x128xf32>
    %27 = arith.addf %25, %26 : vector<64x128xf32>
    %28 = arith.truncf %27 : vector<64x128xf32> to vector<64x128xbf16>
    %c0_8 = arith.constant 0 : index
    %c0_9 = arith.constant 0 : index
    %29 = vector.load %arg2[%c0_8, %c0_9] : memref<128x384xbf16, #tpu.memory_space<vmem>>, vector<128x384xbf16>
    %cst_10 = arith.constant dense<0.000000e+00> : vector<64x384xf32>
    %30 = tpu.matmul %28, %29, %cst_10 {dimension_numbers = #tpu.dot_dimension_numbers<[1], [0], [0], [1], [0, 0, 1, 1], [], []>} : vector<64x128xbf16>, vector<128x384xbf16>, vector<64x384xf32> -> vector<64x384xf32>
    %c0_11 = arith.constant 0 : index
    %c0_12 = arith.constant 0 : index
    %31 = vector.load %arg3[%c0_11, %c0_12] : memref<1x384xf32, #tpu.memory_space<vmem>>, vector<1x384xf32>
    %32 = vector.broadcast %31 : vector<1x384xf32> to vector<64x384xf32>
    %33 = arith.addf %30, %32 : vector<64x384xf32>
    %34 = vector.shape_cast %33 : vector<64x384xf32> to vector<4x16x384xf32>
    %cst_13 = arith.constant 0.000000e+00 : f32
    %35 = vector.broadcast %cst_13 : f32 to vector<64x128xf32>
    %36 = vector.extract_strided_slice %34 {offsets = [0, 0, 0], sizes = [4, 16, 32], strides = [1, 1, 1]} : vector<4x16x384xf32> to vector<4x16x32xf32>
    %37 = arith.truncf %36 : vector<4x16x32xf32> to vector<4x16x32xbf16>
    %38 = vector.extract_strided_slice %34 {offsets = [0, 0, 128], sizes = [4, 16, 32], strides = [1, 1, 1]} : vector<4x16x384xf32> to vector<4x16x32xf32>
    %39 = arith.truncf %38 : vector<4x16x32xf32> to vector<4x16x32xbf16>
    %40 = vector.extract_strided_slice %34 {offsets = [0, 0, 256], sizes = [4, 16, 32], strides = [1, 1, 1]} : vector<4x16x384xf32> to vector<4x16x32xf32>
    %41 = arith.truncf %40 : vector<4x16x32xf32> to vector<4x16x32xbf16>
    "tpu.trace_start"() <{level = 10 : i32, message = "bqd,bkd->bqk"}> : () -> ()
    %cst_14 = arith.constant dense<0.000000e+00> : vector<4x16x16xf32>
    %42 = tpu.matmul %37, %39, %cst_14 {dimension_numbers = #tpu.dot_dimension_numbers<[2], [2], [1], [1], [0, 0, 0, 1, 1, 1], [0], [0]>} : vector<4x16x32xbf16>, vector<4x16x32xbf16>, vector<4x16x16xf32> -> vector<4x16x16xf32>
    "tpu.trace_stop"() : () -> ()
    %cst_15 = arith.constant dense<0xFF800000> : vector<4x16xf32>
    %43 = vector.multi_reduction <maximumf>, %42, %cst_15 [2] : vector<4x16x16xf32> to vector<4x16xf32>
    %44 = vector.shape_cast %43 : vector<4x16xf32> to vector<4x16x1xf32>
    %45 = vector.broadcast %44 : vector<4x16x1xf32> to vector<4x16x16xf32>
    %46 = arith.subf %42, %45 : vector<4x16x16xf32>
    %47 = math.exp %46 : vector<4x16x16xf32>
    %cst_16 = arith.constant dense<0.000000e+00> : vector<4x16xf32>
    %48 = vector.multi_reduction <add>, %47, %cst_16 [2] : vector<4x16x16xf32> to vector<4x16xf32>
    %49 = vector.shape_cast %48 : vector<4x16xf32> to vector<4x16x1xf32>
    %50 = tpu.reciprocal %49 {approx = true} : vector<4x16x1xf32> -> vector<4x16x1xf32>
    %51 = vector.broadcast %50 : vector<4x16x1xf32> to vector<4x16x16xf32>
    %52 = arith.mulf %47, %51 : vector<4x16x16xf32>
    %53 = arith.truncf %52 : vector<4x16x16xf32> to vector<4x16x16xbf16>
    "tpu.trace_start"() <{level = 10 : i32, message = "bqk,bkd->bqd"}> : () -> ()
    %cst_17 = arith.constant dense<0.000000e+00> : vector<4x16x32xf32>
    %54 = tpu.matmul %53, %41, %cst_17 {dimension_numbers = #tpu.dot_dimension_numbers<[2], [1], [1], [2], [0, 0, 0, 1, 1, 2], [0], [0]>} : vector<4x16x16xbf16>, vector<4x16x32xbf16>, vector<4x16x32xf32> -> vector<4x16x32xf32>
    "tpu.trace_stop"() : () -> ()
    %55 = vector.shape_cast %54 : vector<4x16x32xf32> to vector<64x32xf32>
    %56 = arith.truncf %55 : vector<64x32xf32> to vector<64x32xbf16>
    %c0_18 = arith.constant 0 : index
    %c0_19 = arith.constant 0 : index
    %57 = vector.load %arg4[%c0_18, %c0_19] : memref<128x128xbf16, #tpu.memory_space<vmem>>, vector<32x128xbf16>
    %cst_20 = arith.constant dense<0.000000e+00> : vector<64x128xf32>
    %58 = tpu.matmul %56, %57, %cst_20 {dimension_numbers = #tpu.dot_dimension_numbers<[1], [0], [0], [1], [0, 0, 1, 1], [], []>} : vector<64x32xbf16>, vector<32x128xbf16>, vector<64x128xf32> -> vector<64x128xf32>
    %59 = arith.addf %35, %58 : vector<64x128xf32>
    %60 = vector.extract_strided_slice %34 {offsets = [0, 0, 32], sizes = [4, 16, 32], strides = [1, 1, 1]} : vector<4x16x384xf32> to vector<4x16x32xf32>
    %61 = arith.truncf %60 : vector<4x16x32xf32> to vector<4x16x32xbf16>
    %62 = vector.extract_strided_slice %34 {offsets = [0, 0, 160], sizes = [4, 16, 32], strides = [1, 1, 1]} : vector<4x16x384xf32> to vector<4x16x32xf32>
    %63 = arith.truncf %62 : vector<4x16x32xf32> to vector<4x16x32xbf16>
    %64 = vector.extract_strided_slice %34 {offsets = [0, 0, 288], sizes = [4, 16, 32], strides = [1, 1, 1]} : vector<4x16x384xf32> to vector<4x16x32xf32>
    %65 = arith.truncf %64 : vector<4x16x32xf32> to vector<4x16x32xbf16>
    "tpu.trace_start"() <{level = 10 : i32, message = "bqd,bkd->bqk"}> : () -> ()
    %cst_21 = arith.constant dense<0.000000e+00> : vector<4x16x16xf32>
    %66 = tpu.matmul %61, %63, %cst_21 {dimension_numbers = #tpu.dot_dimension_numbers<[2], [2], [1], [1], [0, 0, 0, 1, 1, 1], [0], [0]>} : vector<4x16x32xbf16>, vector<4x16x32xbf16>, vector<4x16x16xf32> -> vector<4x16x16xf32>
    "tpu.trace_stop"() : () -> ()
    %cst_22 = arith.constant dense<0xFF800000> : vector<4x16xf32>
    %67 = vector.multi_reduction <maximumf>, %66, %cst_22 [2] : vector<4x16x16xf32> to vector<4x16xf32>
    %68 = vector.shape_cast %67 : vector<4x16xf32> to vector<4x16x1xf32>
    %69 = vector.broadcast %68 : vector<4x16x1xf32> to vector<4x16x16xf32>
    %70 = arith.subf %66, %69 : vector<4x16x16xf32>
    %71 = math.exp %70 : vector<4x16x16xf32>
    %cst_23 = arith.constant dense<0.000000e+00> : vector<4x16xf32>
    %72 = vector.multi_reduction <add>, %71, %cst_23 [2] : vector<4x16x16xf32> to vector<4x16xf32>
    %73 = vector.shape_cast %72 : vector<4x16xf32> to vector<4x16x1xf32>
    %74 = tpu.reciprocal %73 {approx = true} : vector<4x16x1xf32> -> vector<4x16x1xf32>
    %75 = vector.broadcast %74 : vector<4x16x1xf32> to vector<4x16x16xf32>
    %76 = arith.mulf %71, %75 : vector<4x16x16xf32>
    %77 = arith.truncf %76 : vector<4x16x16xf32> to vector<4x16x16xbf16>
    "tpu.trace_start"() <{level = 10 : i32, message = "bqk,bkd->bqd"}> : () -> ()
    %cst_24 = arith.constant dense<0.000000e+00> : vector<4x16x32xf32>
    %78 = tpu.matmul %77, %65, %cst_24 {dimension_numbers = #tpu.dot_dimension_numbers<[2], [1], [1], [2], [0, 0, 0, 1, 1, 2], [0], [0]>} : vector<4x16x16xbf16>, vector<4x16x32xbf16>, vector<4x16x32xf32> -> vector<4x16x32xf32>
    "tpu.trace_stop"() : () -> ()
    %79 = vector.shape_cast %78 : vector<4x16x32xf32> to vector<64x32xf32>
    %80 = arith.truncf %79 : vector<64x32xf32> to vector<64x32xbf16>
    %c32 = arith.constant 32 : index
    %c0_25 = arith.constant 0 : index
    %81 = vector.load %arg4[%c32, %c0_25] : memref<128x128xbf16, #tpu.memory_space<vmem>>, vector<32x128xbf16>
    %cst_26 = arith.constant dense<0.000000e+00> : vector<64x128xf32>
    %82 = tpu.matmul %80, %81, %cst_26 {dimension_numbers = #tpu.dot_dimension_numbers<[1], [0], [0], [1], [0, 0, 1, 1], [], []>} : vector<64x32xbf16>, vector<32x128xbf16>, vector<64x128xf32> -> vector<64x128xf32>
    %83 = arith.addf %59, %82 : vector<64x128xf32>
    %84 = vector.extract_strided_slice %34 {offsets = [0, 0, 64], sizes = [4, 16, 32], strides = [1, 1, 1]} : vector<4x16x384xf32> to vector<4x16x32xf32>
    %85 = arith.truncf %84 : vector<4x16x32xf32> to vector<4x16x32xbf16>
    %86 = vector.extract_strided_slice %34 {offsets = [0, 0, 192], sizes = [4, 16, 32], strides = [1, 1, 1]} : vector<4x16x384xf32> to vector<4x16x32xf32>
    %87 = arith.truncf %86 : vector<4x16x32xf32> to vector<4x16x32xbf16>
    %88 = vector.extract_strided_slice %34 {offsets = [0, 0, 320], sizes = [4, 16, 32], strides = [1, 1, 1]} : vector<4x16x384xf32> to vector<4x16x32xf32>
    %89 = arith.truncf %88 : vector<4x16x32xf32> to vector<4x16x32xbf16>
    "tpu.trace_start"() <{level = 10 : i32, message = "bqd,bkd->bqk"}> : () -> ()
    %cst_27 = arith.constant dense<0.000000e+00> : vector<4x16x16xf32>
    %90 = tpu.matmul %85, %87, %cst_27 {dimension_numbers = #tpu.dot_dimension_numbers<[2], [2], [1], [1], [0, 0, 0, 1, 1, 1], [0], [0]>} : vector<4x16x32xbf16>, vector<4x16x32xbf16>, vector<4x16x16xf32> -> vector<4x16x16xf32>
    "tpu.trace_stop"() : () -> ()
    %cst_28 = arith.constant dense<0xFF800000> : vector<4x16xf32>
    %91 = vector.multi_reduction <maximumf>, %90, %cst_28 [2] : vector<4x16x16xf32> to vector<4x16xf32>
    %92 = vector.shape_cast %91 : vector<4x16xf32> to vector<4x16x1xf32>
    %93 = vector.broadcast %92 : vector<4x16x1xf32> to vector<4x16x16xf32>
    %94 = arith.subf %90, %93 : vector<4x16x16xf32>
    %95 = math.exp %94 : vector<4x16x16xf32>
    %cst_29 = arith.constant dense<0.000000e+00> : vector<4x16xf32>
    %96 = vector.multi_reduction <add>, %95, %cst_29 [2] : vector<4x16x16xf32> to vector<4x16xf32>
    %97 = vector.shape_cast %96 : vector<4x16xf32> to vector<4x16x1xf32>
    %98 = tpu.reciprocal %97 {approx = true} : vector<4x16x1xf32> -> vector<4x16x1xf32>
    %99 = vector.broadcast %98 : vector<4x16x1xf32> to vector<4x16x16xf32>
    %100 = arith.mulf %95, %99 : vector<4x16x16xf32>
    %101 = arith.truncf %100 : vector<4x16x16xf32> to vector<4x16x16xbf16>
    "tpu.trace_start"() <{level = 10 : i32, message = "bqk,bkd->bqd"}> : () -> ()
    %cst_30 = arith.constant dense<0.000000e+00> : vector<4x16x32xf32>
    %102 = tpu.matmul %101, %89, %cst_30 {dimension_numbers = #tpu.dot_dimension_numbers<[2], [1], [1], [2], [0, 0, 0, 1, 1, 2], [0], [0]>} : vector<4x16x16xbf16>, vector<4x16x32xbf16>, vector<4x16x32xf32> -> vector<4x16x32xf32>
    "tpu.trace_stop"() : () -> ()
    %103 = vector.shape_cast %102 : vector<4x16x32xf32> to vector<64x32xf32>
    %104 = arith.truncf %103 : vector<64x32xf32> to vector<64x32xbf16>
    %c64 = arith.constant 64 : index
    %c0_31 = arith.constant 0 : index
    %105 = vector.load %arg4[%c64, %c0_31] : memref<128x128xbf16, #tpu.memory_space<vmem>>, vector<32x128xbf16>
    %cst_32 = arith.constant dense<0.000000e+00> : vector<64x128xf32>
    %106 = tpu.matmul %104, %105, %cst_32 {dimension_numbers = #tpu.dot_dimension_numbers<[1], [0], [0], [1], [0, 0, 1, 1], [], []>} : vector<64x32xbf16>, vector<32x128xbf16>, vector<64x128xf32> -> vector<64x128xf32>
    %107 = arith.addf %83, %106 : vector<64x128xf32>
    %108 = vector.extract_strided_slice %34 {offsets = [0, 0, 96], sizes = [4, 16, 32], strides = [1, 1, 1]} : vector<4x16x384xf32> to vector<4x16x32xf32>
    %109 = arith.truncf %108 : vector<4x16x32xf32> to vector<4x16x32xbf16>
    %110 = vector.extract_strided_slice %34 {offsets = [0, 0, 224], sizes = [4, 16, 32], strides = [1, 1, 1]} : vector<4x16x384xf32> to vector<4x16x32xf32>
    %111 = arith.truncf %110 : vector<4x16x32xf32> to vector<4x16x32xbf16>
    %112 = vector.extract_strided_slice %34 {offsets = [0, 0, 352], sizes = [4, 16, 32], strides = [1, 1, 1]} : vector<4x16x384xf32> to vector<4x16x32xf32>
    %113 = arith.truncf %112 : vector<4x16x32xf32> to vector<4x16x32xbf16>
    "tpu.trace_start"() <{level = 10 : i32, message = "bqd,bkd->bqk"}> : () -> ()
    %cst_33 = arith.constant dense<0.000000e+00> : vector<4x16x16xf32>
    %114 = tpu.matmul %109, %111, %cst_33 {dimension_numbers = #tpu.dot_dimension_numbers<[2], [2], [1], [1], [0, 0, 0, 1, 1, 1], [0], [0]>} : vector<4x16x32xbf16>, vector<4x16x32xbf16>, vector<4x16x16xf32> -> vector<4x16x16xf32>
    "tpu.trace_stop"() : () -> ()
    %cst_34 = arith.constant dense<0xFF800000> : vector<4x16xf32>
    %115 = vector.multi_reduction <maximumf>, %114, %cst_34 [2] : vector<4x16x16xf32> to vector<4x16xf32>
    %116 = vector.shape_cast %115 : vector<4x16xf32> to vector<4x16x1xf32>
    %117 = vector.broadcast %116 : vector<4x16x1xf32> to vector<4x16x16xf32>
    %118 = arith.subf %114, %117 : vector<4x16x16xf32>
    %119 = math.exp %118 : vector<4x16x16xf32>
    %cst_35 = arith.constant dense<0.000000e+00> : vector<4x16xf32>
    %120 = vector.multi_reduction <add>, %119, %cst_35 [2] : vector<4x16x16xf32> to vector<4x16xf32>
    %121 = vector.shape_cast %120 : vector<4x16xf32> to vector<4x16x1xf32>
    %122 = tpu.reciprocal %121 {approx = true} : vector<4x16x1xf32> -> vector<4x16x1xf32>
    %123 = vector.broadcast %122 : vector<4x16x1xf32> to vector<4x16x16xf32>
    %124 = arith.mulf %119, %123 : vector<4x16x16xf32>
    %125 = arith.truncf %124 : vector<4x16x16xf32> to vector<4x16x16xbf16>
    "tpu.trace_start"() <{level = 10 : i32, message = "bqk,bkd->bqd"}> : () -> ()
    %cst_36 = arith.constant dense<0.000000e+00> : vector<4x16x32xf32>
    %126 = tpu.matmul %125, %113, %cst_36 {dimension_numbers = #tpu.dot_dimension_numbers<[2], [1], [1], [2], [0, 0, 0, 1, 1, 2], [0], [0]>} : vector<4x16x16xbf16>, vector<4x16x32xbf16>, vector<4x16x32xf32> -> vector<4x16x32xf32>
    "tpu.trace_stop"() : () -> ()
    %127 = vector.shape_cast %126 : vector<4x16x32xf32> to vector<64x32xf32>
    %128 = arith.truncf %127 : vector<64x32xf32> to vector<64x32xbf16>
    %c96 = arith.constant 96 : index
    %c0_37 = arith.constant 0 : index
    %129 = vector.load %arg4[%c96, %c0_37] : memref<128x128xbf16, #tpu.memory_space<vmem>>, vector<32x128xbf16>
    %cst_38 = arith.constant dense<0.000000e+00> : vector<64x128xf32>
    %130 = tpu.matmul %128, %129, %cst_38 {dimension_numbers = #tpu.dot_dimension_numbers<[1], [0], [0], [1], [0, 0, 1, 1], [], []>} : vector<64x32xbf16>, vector<32x128xbf16>, vector<64x128xf32> -> vector<64x128xf32>
    %131 = arith.addf %107, %130 : vector<64x128xf32>
    %132 = vector.broadcast %5 : vector<1x128xf32> to vector<64x128xf32>
    %133 = arith.addf %131, %132 : vector<64x128xf32>
    %134 = arith.addf %133, %7 : vector<64x128xf32>
    %cst_39 = arith.constant dense<0.000000e+00> : vector<64xf32>
    %135 = vector.multi_reduction <add>, %134, %cst_39 [1] : vector<64x128xf32> to vector<64xf32>
    %136 = vector.shape_cast %135 : vector<64xf32> to vector<64x1xf32>
    %cst_40 = arith.constant 1.280000e+02 : f32
    %137 = vector.broadcast %cst_40 : f32 to vector<64x1xf32>
    %138 = arith.divf %136, %137 : vector<64x1xf32>
    %139 = vector.broadcast %138 : vector<64x1xf32> to vector<64x128xf32>
    %140 = arith.subf %134, %139 : vector<64x128xf32>
    %141 = arith.mulf %140, %140 : vector<64x128xf32>
    %cst_41 = arith.constant dense<0.000000e+00> : vector<64xf32>
    %142 = vector.multi_reduction <add>, %141, %cst_41 [1] : vector<64x128xf32> to vector<64xf32>
    %143 = vector.shape_cast %142 : vector<64xf32> to vector<64x1xf32>
    %cst_42 = arith.constant 1.280000e+02 : f32
    %144 = vector.broadcast %cst_42 : f32 to vector<64x1xf32>
    %145 = arith.divf %143, %144 : vector<64x1xf32>
    %cst_43 = arith.constant 9.99999997E-7 : f32
    %146 = vector.broadcast %cst_43 : f32 to vector<64x1xf32>
    %147 = arith.addf %145, %146 : vector<64x1xf32>
    %148 = math.rsqrt %147 : vector<64x1xf32>
    %149 = vector.broadcast %148 : vector<64x1xf32> to vector<64x128xf32>
    %150 = arith.mulf %140, %149 : vector<64x128xf32>
    %151 = vector.broadcast %3 : vector<1x128xf32> to vector<64x128xf32>
    %152 = arith.mulf %150, %151 : vector<64x128xf32>
    %153 = vector.broadcast %4 : vector<1x128xf32> to vector<64x128xf32>
    %154 = arith.addf %152, %153 : vector<64x128xf32>
    %155 = vector.shape_cast %154 : vector<64x128xf32> to vector<4x16x128xf32>
    %c0_44 = arith.constant 0 : index
    %c0_45 = arith.constant 0 : index
    %c0_46 = arith.constant 0 : index
    %156 = vector.load %arg6[%c0_44, %c0_45, %c0_46] : memref<4x16x128xf32, #tpu.memory_space<vmem>>, vector<4x16x128xf32>
    tpu.vector_store %arg6[%c0_44, %c0_45, %c0_46], %155 {strides = array<i32>} : memref<4x16x128xf32, #tpu.memory_space<vmem>>, vector<4x16x128xf32>,
    return
  }
  func.func @transform_0(%arg0: i32) -> (i32, i32, i32) {
    %c0_i32 = arith.constant 0 : i32
    %c0_i32_0 = arith.constant 0 : i32
    %c0_i32_1 = arith.constant 0 : i32
    return %arg0, %c0_i32, %c0_i32_0 : i32, i32, i32
  }
  func.func @transform_1(%arg0: i32) -> (i32, i32) {
    %c0_i32 = arith.constant 0 : i32
    %c0_i32_0 = arith.constant 0 : i32
    %c0_i32_1 = arith.constant 0 : i32
    return %c0_i32, %c0_i32_0 : i32, i32
  }
  func.func @transform_2(%arg0: i32) -> (i32, i32) {
    %c0_i32 = arith.constant 0 : i32
    %c0_i32_0 = arith.constant 0 : i32
    %c0_i32_1 = arith.constant 0 : i32
    return %c0_i32, %c0_i32_0 : i32, i32
  }
  func.func @transform_3(%arg0: i32) -> (i32, i32) {
    %c0_i32 = arith.constant 0 : i32
    %c0_i32_0 = arith.constant 0 : i32
    %c0_i32_1 = arith.constant 0 : i32
    return %c0_i32, %c0_i32_0 : i32, i32
  }
  func.func @transform_4(%arg0: i32) -> (i32, i32) {
    %c0_i32 = arith.constant 0 : i32
    %c0_i32_0 = arith.constant 0 : i32
    %c0_i32_1 = arith.constant 0 : i32
    return %c0_i32, %c0_i32_0 : i32, i32
  }
  func.func @transform_5(%arg0: i32) -> (i32, i32, i32) {
    %c0_i32 = arith.constant 0 : i32
    %c0_i32_0 = arith.constant 0 : i32
    %c0_i32_1 = arith.constant 0 : i32
    return %arg0, %c0_i32, %c0_i32_0 : i32, i32, i32
  }
}

</mosaic_0001>

<bundles_post_ra>
// kernel: tpu_custom_call.1
= control target key start
LH: loop header
LB: loop body
LE: loop exit
PB: predicated region body
PF: predicated region fallthrough
CT: control target
= control target key end

     0   :  { %10 = vsyncpa [#allocation3], 0  ;;  %s5140_s0 = inlined_call_operand.hbm [shape: f32[8,16,128], index: 0, kind: input, shape index: {}]   ;;  %s5141_s1 = inlined_call_operand.hbm [shape: bf16[128,384], index: 1, kind: input, shape index: {}]   ;;  %s5142_s2 = inlined_call_operand.vmem [shape: f32[1,384], index: 2, kind: input, shape index: {}]   ;;  %s5143_s3 = inlined_call_operand.hbm [shape: bf16[128,128], index: 3, kind: input, shape index: {}]   ;;  %s5144_s4 = inlined_call_operand.vmem [shape: f32[8,128], index: 4, kind: input, shape index: {}]   ;;  %s5145_s5 = inlined_call_operand.hbm [shape: f32[8,16,128], index: 5, kind: output, shape index: {}]  }
   0x1   :  { %12 = vsyncpa [#allocation3 + $0x1], 0 }
   0x2   :  { %13 = vsyncpa [#allocation6], 0 }
   0x3   :  { %14 = vsyncpa [#allocation4], 0 }
   0x4   :  { %16 = vsyncpa [#allocation4 + $0x1], 0  ;;  %s4290_s18 = smov 0   ;;  %s4292_s19 = smov 0  }
   0x5   :  { %s4294_s20 = smov 0   ;;  %s4296_s21 = smov 0  }
   0x6 LB: > { %s4311_s22 = sadd.s32 4294967295, %s4240_s21   ;;  %s3302_s23 = sadd.s32 4294967294, %s4240_s21   ;;  %s4240_s21 = sphi %s4296_s21, %s5165_s21   ;;  %s4236_s20 = sphi %s4294_s20, %s5164_s20   ;;  %s4232_s19 = sphi %s4292_s19, %s5163_s19   ;;  %s4228_s18 = sphi %s4290_s18, %s5162_s18  }
   0x7   : > { %p42_p0 = scmp.ne.s32.totalorder %s4232_s19, %s4228_s18  ;;  %p5146_p1 = scmp.eq.s32.totalorder %s4311_s22, 0 }
   0x8   : > { %p156_p3 = scmp.eq.s32.totalorder %s3302_s23, 1  ;;  %p3303_p5 = scmp.ge.s32.totalorder %s4240_s21, 1 }
   0x9   : > { %p4320_p4 = por %p5146_p1, %p42_p0  ;;  %p163_p7 = scmp.lt.s32.totalorder %s4240_s21, 3 }
   0xa   : > { %p4325_p6 = por %p156_p3, %p42_p0  ;;  %s4242_s27 = smov [#allocation5]  }
   0xb   : > { %s5149_s24 = scalar_select %p4320_p4, 1, 0 }
   0xc   : > { %s5150_s25 = scalar_select %p4325_p6, 1, 0 }
   0xd   : > { %p4330_p8 = pnand %p3303_p5, %p163_p7  ;;  %s175_s28 = sshll.u32 %s4242_s27, 4  ;;  %s4334_s28 = int_to_ptr.vmem [resolvable:$true] %s175_s28 }
   0xe   : > { %s4243_s30 = smov [#allocation7]   ;;  %s4084_s9 = scalar_lea.hbm %s5141_s1, 3072 }
   0xf   : > { %p3806_p9 = pneg %p4330_p8  ;;  %s191_s6 = sshll.u32 %s4243_s30, 4  ;;  %s4345_s6 = int_to_ptr.vmem [resolvable:$true] %s191_s6 }
  0x10   : > { %p4085_p12 = scmp.ne.s32.totalorder %s5141_s1, %s4084_s9  ;;  %p4091_p5 = scmp.lt.u32.totalorder %s4084_s9, %s5141_s1 }
  0x11   : > { %p4341_p11 = pnand %p3806_p9, %p5146_p1 }
  0x13   : > { %p4086_p13 = pneg %p4341_p11 }
  0x15   : > { %p4087_p0 = pnand %p4086_p13, %p4085_p12 }
  0x17   : > { %p4088_p3 = pneg %p4087_p0 }
  0x19   : > { %p4093_p7 = pnand %p4091_p5, %p4088_p3 }
  0x1b   : > { %4096 = shalt.err (!%p4093_p7)
}
  0x1c   : > { %s4097_s14 = scalar_lea.vmem %s4334_s28, 3072  ;;  %p4105_p2 = scmp.lt.s32.totalorder %s4334_s28, %s4334_s28 }
  0x1d   : > { %p4098_p9 = scmp.ne.s32.totalorder %s4334_s28, %s4097_s14  ;;  %p4106_p12 = scmp.lt.s32.totalorder %s4097_s14, %s4097_s14 }
  0x1f   : > { %p4100_p10 = pnand %p4098_p9, %p4086_p13  ;;  %p4107_p0 = por %p4106_p12, %p4105_p2 }
  0x21   : > { %p4101_p1 = pneg %p4100_p10 }
  0x23   : > { %p4108_p6 = pnand %p4107_p0, %p4101_p1 }
  0x25   : > { %4111 = shalt.err (!%p4108_p6)
}
  0x26   : > { %s4244_s15 = smov 192   ;;  %s4245_s16 = smov 12  }
  0x27   : > { %3809 = dma.hbm_to_vmem [thread:$0]  (!%p4341_p11), %s5141_s1, 3072, %s4334_s28, [#allocation6], %s4244_s15, %s4244_s15, %s4245_s16  }
  0x28   : > { %s4112_s7 = scalar_lea.hbm %s5143_s3, 1024 }
  0x29   : > { %p4113_p2 = scmp.ne.s32.totalorder %s5143_s3, %s4112_s7  ;;  %p4119_p10 = scmp.lt.u32.totalorder %s4112_s7, %s5143_s3 }
  0x2b   : > { %p4115_p1 = pnand %p4113_p2, %p4086_p13 }
  0x2d   : > { %p4116_p6 = pneg %p4115_p1 }
  0x2f   : > { %p4121_p3 = pnand %p4119_p10, %p4116_p6 }
  0x31   : > { %4124 = shalt.err (!%p4121_p3)
}
  0x32   : > { %s4125_s28 = scalar_lea.vmem %s4345_s6, 1024  ;;  %p4133_p12 = scmp.lt.s32.totalorder %s4345_s6, %s4345_s6 }
  0x33   : > { %p4126_p5 = scmp.ne.s32.totalorder %s4345_s6, %s4125_s28  ;;  %p4134_p0 = scmp.lt.s32.totalorder %s4125_s28, %s4125_s28 }
  0x35   : > { %p4128_p7 = pnand %p4126_p5, %p4086_p13  ;;  %p4135_p2 = por %p4134_p0, %p4133_p12 }
  0x37   : > { %p4129_p9 = pneg %p4128_p7 }
  0x39   : > { %p4136_p1 = pnand %p4135_p2, %p4129_p9 }
  0x3b   : > { %4139 = shalt.err (!%p4136_p1)
}
  0x3c   : > { %s4246_s12 = smov 64   ;;  %s4247_s13 = smov 4  }
  0x3d   : > { %3812 = dma.hbm_to_vmem [thread:$0]  (!%p4341_p11), %s5143_s3, 1024, %s4345_s6, [#allocation6], %s4246_s12, %s4246_s12, %s4247_s13  }
  0x3e   : > { %s4400_s16 = sadd.s32 1, %s4240_s21   ;;  %s29_s23 = sadd.s32 1, %s4236_s20 }
  0x3f   : > { %s26_s17 = ssub.s32 %s4240_s21, %s4400_s16  ;;  %p36_p6 = scmp.ne.s32.totalorder %s4236_s20, %s4232_s19 }
  0x40   : > { %p27_p13 = scmp.eq.s32.totalorder %s26_s17, 0  ;;  %p37_p10 = scmp.eq.s32.totalorder %s4240_s21, 0 }
  0x41   : > { %p5153_p5 = scmp.eq.s32.totalorder %s4311_s22, 1  ;;  %p3823_p9 = scmp.lt.s32.totalorder %s4240_s21, 2 }
  0x42   : > { %s4409_s27 = scalar_select %p27_p13, %s4236_s20, %s29_s23  }
  0x43   : > { %p38_p3 = por %p37_p10, %p36_p6  ;;  %p4413_p7 = por %p5153_p5, %p36_p6 }
  0x44   : > { %s208_s29 = sand.u32 1, %s4236_s20   ;;  %s3403_s6 = sshll.u32 %s4240_s21, 10 }
  0x45   : > { %s5154_s30 = scalar_select %p4413_p7, 1, 0 }
  0x46   : > { %s3307_s7 = sshll.u32 %s208_s29, 6  ;;  %s4423_s10 = scalar_lea.hbm %s5140_s0, %s3403_s6 }
  0x47   : > { %s212_s11 = scalar_lea.vmem [#allocation2], %s3307_s7  ;;  %p4427_p11 = pnand %p3823_p9, %p38_p3 }
  0x48   : > { %s220_s28 = sshll.u32 %s212_s11, 4  ;;  %s4431_s13 = scalar_lea.sflag [#allocation3], %s208_s29  ;;  %s4425_s28 = int_to_ptr.vmem [resolvable:$true] %s220_s28 }
  0x49   : > { %s4140_s14 = scalar_lea.hbm %s4423_s10, 1024  ;;  %p4142_p0 = pneg %p4427_p11 }
  0x4a   : > { %p4141_p12 = scmp.ne.s32.totalorder %s4423_s10, %s4140_s14  ;;  %s4145_s23 = scalar_lea.hbm %s5140_s0, 2048 }
  0x4b   : > { %p4146_p13 = scmp.lt.u32.totalorder %s4423_s10, %s5140_s0  ;;  %p4147_p6 = scmp.lt.u32.totalorder %s4145_s23, %s4140_s14 }
  0x4c   : > { %p4143_p2 = pnand %p4142_p0, %p4141_p12  ;;  %p4149_p3 = scmp.lt.u32.totalorder %s4140_s14, %s4423_s10 }
  0x4d   : > { %p4148_p10 = por %p4147_p6, %p4146_p13 }
  0x4e   : > { %p4144_p1 = pneg %p4143_p2 }
  0x4f   : > { %p4150_p5 = por %p4149_p3, %p4148_p10 }
  0x51   : > { %p4151_p9 = pnand %p4150_p5, %p4144_p1 }
  0x53   : > { %4154 = shalt.err (!%p4151_p9)
}
  0x54   : > { %s4155_s29 = scalar_lea.vmem %s4425_s28, 1024  ;;  %s4248_s8 = smov [#allocation2]  }
  0x55   : > { %p4156_p12 = scmp.ne.s32.totalorder %s4425_s28, %s4155_s29  ;;  %s4160_s9 = sshll.u32 %s4248_s8, 4  ;;  %s4161_s9 = int_to_ptr.vmem [resolvable:$false] %s4160_s9 }
  0x56   : > { %s4162_s11 = scalar_lea.vmem %s4161_s9, 2048  ;;  %p4163_p4 = scmp.lt.s32.totalorder %s4425_s28, %s4161_s9 }
  0x57   : > { %p4158_p2 = pnand %p4156_p12, %p4142_p0  ;;  %p4164_p13 = scmp.lt.s32.totalorder %s4162_s11, %s4155_s29 }
  0x59   : > { %p4159_p7 = pneg %p4158_p2  ;;  %p4165_p6 = por %p4164_p13, %p4163_p4 }
  0x5b   : > { %p4166_p10 = pnand %p4165_p6, %p4159_p7 }
  0x5d   : > { %4169 = shalt.err (!%p4166_p10)
}
  0x5e   : > { %s4249_s14 = smov 128   ;;  %s4250_s15 = smov 8  }
  0x5f   : > { %3816 = dma.hbm_to_vmem [thread:$0]  (!%p4427_p11), %s4423_s10, 1024, %s4425_s28, %s4431_s13, %s4249_s14, %s4249_s14, %s4250_s15  }
  0x60   : > { %232 = sbr.rel (%p4330_p8) target bundleno = 3989 (0xf95), region = 40  ;;  %s4462_s17 = sand.u32 (!%p4330_p8), 1, %s4232_s19  }
  0x61   : > { %s3312_s23 = sshll.u32 (!%p4330_p8), %s4462_s17, 6  ;;  %s235_s7 = scalar_lea.sflag (!%p4330_p8), [#allocation3], %s4462_s17 }
  0x62   : > { %s4468_s6 = scalar_lea.vmem (!%p4330_p8), [#allocation2], %s3312_s23  ;;  %p5156_p4 = scmp.ne.s32.totalorder (!%p4330_p8), %s5149_s24, 0 }
  0x67   : > { %4215 = dma.done.wait (%p5156_p4), %s235_s7, 1024  }
  0x68   : > { %4217 = vsyncadd (%p5156_p4), %s235_s7, 4294966272  ;;  %p5157_p7 = scmp.eq.s32.totalorder %s4311_s22, 0 }
  0x6a   : > { %4219 = dma.done.wait (%p5157_p7), [#allocation6], 4096   ;;  %p5158_p8 = pmov %p5157_p7 }
  0x6b   : > { %v277_v0 = vld [vmem:[%s4468_s6] sm:$0xff]  ;;  %v279_v1 = vld [vmem:[%s4468_s6 + $0x10] sm:$0xff]  ;;  %v278_v2 = vld [vmem:[%s4468_s6 + $0x8] sm:$0xff]  ;;  %v4251_v63 = vmov 0   ;;  %vm4253_vm0 = vmmov 0   ;;  %vm729_vm1 = vcmask 261120  }
  0x6c   : > { %4221 = vsyncadd (%p5158_p8), [#allocation6], 4294963200  ;;  %285 = vadd.xlane.f32.xlu0 %v277_v0  ;;  %289 = vadd.xlane.f32.xlu1 %v279_v1  ;;  %v280_v3 = vld [vmem:[%s4468_s6 + $0x18] sm:$0xff]  ;;  %v281_v4 = vld [vmem:[%s4468_s6 + $0x20] sm:$0xff]  ;;  %vm918_vm2 = vcmask 130048   ;;  %s4254_s12 = smov 96  }
  0x6d   : > { %v282_v5 = vld [vmem:[%s4468_s6 + $0x28] sm:$0xff]  ;;  %v283_v6 = vld [vmem:[%s4468_s6 + $0x30] sm:$0xff]  ;;  %v284_v7 = vld [vmem:[%s4468_s6 + $0x38] sm:$0xff]  ;;  %611 = vmatprep.mubr.bf16.mxu0 %v4251_v63  ;;  %s4255_s13 = smov 64   ;;  %s4256_s29 = smov 32  }
  0x6e   : > { %v3875_v8 = vld [vmem:[#allocation5 + $0x4] ss:$12 sps:$4 sm:$0xff]   ;;  %v3877_v9 = vld [vmem:[#allocation5] ss:$12 sps:$4 sm:$0xff]   ;;  %v3878_v10 = vld [vmem:[#allocation5 + $0x1c] ss:$12 sps:$4 sm:$0xff]  }
  0x6f   : > { %v3880_v11 = vld [vmem:[#allocation5 + $0x8] ss:$12 sps:$4 sm:$0xff]   ;;  %579 = vmatprep.subr.bf16.mxu0 %v3875_v8  ;;  %v3881_v44 = vld [vmem:[#allocation5 + $0x18] ss:$12 sps:$4 sm:$0xff]   ;;  %v3884_v46 = vld [vmem:[#allocation5 + $0x20] ss:$12 sps:$4 sm:$0xff]  }
  0x70   : > { %287 = vadd.xlane.f32.xlu0 %v278_v2  ;;  %291 = vadd.xlane.f32.xlu1 %v280_v3  ;;  %v3882_v45 = vld [vmem:[#allocation5 + $0x34] ss:$12 sps:$4 sm:$0xff]   ;;  %v3885_v47 = vld [vmem:[#allocation5 + $0x30] ss:$12 sps:$4 sm:$0xff]   ;;  %v3886_v48 = vld [vmem:[#allocation5 + $0x4c] ss:$12 sps:$4 sm:$0xff]  }
  0x71   : > { %580 = vmatpush1.bf16.msra.mxu0 %v3877_v9  ;;  %3506 = vmatprep.subr.bf16.mxu1 %v3880_v11  ;;  %v3888_v49 = vld [vmem:[#allocation5 + $0x38] ss:$12 sps:$4 sm:$0xff]   ;;  %v3889_v50 = vld [vmem:[#allocation5 + $0x48] ss:$12 sps:$4 sm:$0xff]   ;;  %v3892_v52 = vld [vmem:[#allocation5 + $0x50] ss:$12 sps:$4 sm:$0xff]  }
  0x72   : > { %581 = vmatprep.subr.bf16.mxu0 %v3878_v10  ;;  %3507 = vmatpush3.bf16.msra.mxu1 %v3880_v11  ;;  %v3890_v51 = vld [vmem:[#allocation5 + $0x64] ss:$12 sps:$4 sm:$0xff]   ;;  %v3893_v53 = vld [vmem:[#allocation5 + $0x60] ss:$12 sps:$4 sm:$0xff]   ;;  %v3894_v54 = vld [vmem:[#allocation5 + $0x7c] ss:$12 sps:$4 sm:$0xff]  }
  0x73   : > { %3508 = vmatprep.subr.bf16.mxu1 %v3884_v46  ;;  %v3896_v55 = vld [vmem:[#allocation5 + $0x68] ss:$12 sps:$4 sm:$0xff]   ;;  %v3897_v56 = vld [vmem:[#allocation5 + $0x78] ss:$12 sps:$4 sm:$0xff]   ;;  %v3900_v58 = vld [vmem:[#allocation5 + $0x80] ss:$12 sps:$4 sm:$0xff]  }
  0x74   : > { %293 = vadd.xlane.f32.xlu0 %v281_v4  ;;  %295 = vadd.xlane.f32.xlu1 %v282_v5  ;;  %v3898_v57 = vld [vmem:[#allocation5 + $0x94] ss:$12 sps:$4 sm:$0xff]   ;;  %v3901_v59 = vld [vmem:[#allocation5 + $0x90] ss:$12 sps:$4 sm:$0xff]   ;;  %v3902_v60 = vld [vmem:[#allocation5 + $0xac] ss:$12 sps:$4 sm:$0xff]  }
  0x75   : > { %582 = vmatpush1.bf16.msra.mxu0 %v3881_v44  ;;  %v3904_v61 = vld [vmem:[#allocation5 + $0x98] ss:$12 sps:$4 sm:$0xff]   ;;  %v3905_v62 = vld [vmem:[#allocation5 + $0xa8] ss:$12 sps:$4 sm:$0xff]   ;;  %s5075_s11 = scalar_lea.vmem [#allocation8], %s3312_s23  ;;  %s3405_s14 = sshll.u32 %s4311_s22, 10 }
  0x76   : > { %583 = vmatprep.subr.bf16.mxu0 %v3882_v45  ;;  %3509 = vmatpush3.bf16.msra.mxu1 %v3884_v46  ;;  %s3210_s15 = sshll.u32 %s5075_s11, 4  ;;  %s3196_s24 = scalar_lea.sflag [#allocation4], %s4462_s17  ;;  %s5094_s15 = int_to_ptr.vmem [resolvable:$true] %s3210_s15 }
  0x77   : > { %3510 = vmatprep.subr.bf16.mxu1 %v3888_v49  ;;  %s4170_s26 = scalar_lea.vmem %s5094_s15, 1024  ;;  %p5159_p0 = scmp.ne.s32.totalorder %s5154_s30, 0 }
  0x78   : > { %297 = vadd.xlane.f32.xlu0 %v283_v6  ;;  %299 = vadd.xlane.f32.xlu1 %v284_v7  ;;  %p4171_p11 = scmp.ne.s32.totalorder %s5094_s15, %s4170_s26  ;;  %s4257_s22 = smov [#allocation8]  }
  0x79   : > { %584 = vmatpush1.bf16.msra.mxu0 %v3885_v47  ;;  %s4174_s10 = sshll.u32 %s4257_s22, 4  ;;  %s4175_s10 = int_to_ptr.vmem [resolvable:$false] %s4174_s10 }
  0x7a   : > { %585 = vmatprep.subr.bf16.mxu0 %v3886_v48  ;;  %3511 = vmatpush3.bf16.msra.mxu1 %v3888_v49  ;;  %p4172_p1 = pnand %p4171_p11, %p5159_p0  ;;  %s4176_s28 = scalar_lea.vmem %s4175_s10, 2048 }
  0x7b   : > { %3512 = vmatprep.subr.bf16.mxu1 %v3892_v52  ;;  %p4177_p5 = scmp.lt.s32.totalorder %s5094_s15, %s4175_s10  ;;  %p4178_p9 = scmp.lt.s32.totalorder %s4176_s28, %s4170_s26 }
  0x7c   : > { %p4173_p3 = pneg %p4172_p1 }
  0x7d   : > { %586 = vmatpush1.bf16.msra.mxu0 %v3889_v50  ;;  %p4179_p12 = por %p4178_p9, %p4177_p5 }
  0x7e   : > { %587 = vmatprep.subr.bf16.mxu0 %v3890_v51  ;;  %3513 = vmatpush3.bf16.msra.mxu1 %v3892_v52 }
  0x7f   : > { %3514 = vmatprep.subr.bf16.mxu1 %v3896_v55  ;;  %p4180_p2 = pnand %p4179_p12, %p4173_p3 }
  0x81   : > { %588 = vmatpush1.bf16.msra.mxu0 %v3893_v53 }
  0x82   : > { %589 = vmatprep.subr.bf16.mxu0 %v3894_v54  ;;  %3515 = vmatpush3.bf16.msra.mxu1 %v3896_v55 }
  0x83   : > { %3516 = vmatprep.subr.bf16.mxu1 %v3900_v58 }
  0x85   : > { %590 = vmatpush1.bf16.msra.mxu0 %v3897_v56 }
  0x86   : > { %591 = vmatprep.subr.bf16.mxu0 %v3898_v57  ;;  %3517 = vmatpush3.bf16.msra.mxu1 %v3900_v58 }
  0x87   : > { %3518 = vmatprep.subr.bf16.mxu1 %v3904_v61 }
  0x89   : > { %592 = vmatpush1.bf16.msra.mxu0 %v3901_v59 }
  0x8a   : > { %593 = vmatprep.subr.bf16.mxu0 %v3902_v60  ;;  %3519 = vmatpush3.bf16.msra.mxu1 %v3904_v61 }
  0x8d   : > { %594 = vmatpush1.bf16.msra.mxu0 %v3905_v62 }
  0xf9   : > { %v286_v12 = vpop.xlane.xlu0 %285  ;;  %v290_v13 = vpop.xlane.xlu1 %289 }
  0xfa   : > { %v302_v14 = vmul.f32 0.0078125, %v286_v12  ;;  %v304_v15 = vmul.f32 0.0078125, %v290_v13 }
  0xfc   : > { %v4486_v16 = vsub.f32 %v277_v0, %v302_v14  ;;  %v4488_v17 = vsub.f32 %v279_v1, %v304_v15  ;;  %v3906_v0 = vld [vmem:[#allocation5 + $0xb0] ss:$12 sps:$4 sm:$0xff]  }
  0xfd   : > { %v288_v18 = vpop.xlane.xlu0 %287  ;;  %v292_v19 = vpop.xlane.xlu1 %291  ;;  %3520 = vmatprep.subr.bf16.mxu1 %v3906_v0 }
  0xfe   : > { %v303_v20 = vmul.f32 0.0078125, %v288_v18  ;;  %v318_v21 = vmul.f32 %v4486_v16, %v4486_v16  ;;  %v305_v22 = vmul.f32 0.0078125, %v292_v19  ;;  %v320_v23 = vmul.f32 %v4488_v17, %v4488_v17  ;;  %3521 = vmatpush3.bf16.msra.mxu1 %v3906_v0 }
 0x100   : > { %326 = vadd.xlane.f32.xlu0 %v318_v21  ;;  %v4494_v24 = vsub.f32 %v278_v2, %v303_v20  ;;  %v4496_v25 = vsub.f32 %v280_v3, %v305_v22 }
 0x101   : > { %v294_v26 = vpop.xlane.xlu0 %293  ;;  %v296_v27 = vpop.xlane.xlu1 %295 }
 0x102   : > { %v306_v28 = vmul.f32 0.0078125, %v294_v26  ;;  %v319_v29 = vmul.f32 %v4494_v24, %v4494_v24  ;;  %v307_v30 = vmul.f32 0.0078125, %v296_v27  ;;  %v321_v31 = vmul.f32 %v4496_v25, %v4496_v25  ;;  %v276_v27 = vld [vmem:[%s5144_s4] sm:$0xff] }
 0x104   : > { %330 = vadd.xlane.f32.xlu0 %v320_v23  ;;  %328 = vadd.xlane.f32.xlu1 %v319_v29  ;;  %v4502_v32 = vsub.f32 %v281_v4, %v306_v28  ;;  %v4504_v33 = vsub.f32 %v282_v5, %v307_v30 }
 0x105   : > { %v298_v34 = vpop.xlane.xlu0 %297  ;;  %v300_v35 = vpop.xlane.xlu1 %299 }
 0x106   : > { %v308_v36 = vmul.f32 0.0078125, %v298_v34  ;;  %v322_v37 = vmul.f32 %v4502_v32, %v4502_v32  ;;  %v309_v38 = vmul.f32 0.0078125, %v300_v35  ;;  %v323_v39 = vmul.f32 %v4504_v33, %v4504_v33 }
 0x108   : > { %332 = vadd.xlane.f32.xlu1 %v321_v31  ;;  %334 = vadd.xlane.f32.xlu0 %v322_v37  ;;  %v4510_v40 = vsub.f32 %v283_v6, %v308_v36  ;;  %v4512_v41 = vsub.f32 %v284_v7, %v309_v38  ;;  %v374_v6 = vlaneseq }
 0x10a   : > { %v324_v42 = vmul.f32 %v4510_v40, %v4510_v40  ;;  %v325_v43 = vmul.f32 %v4512_v41, %v4512_v41  ;;  %v4519_v13 = vshrl.u32 %v374_v6, 7 }
 0x10c   : > { %336 = vadd.xlane.f32.xlu1 %v323_v39  ;;  %338 = vadd.xlane.f32.xlu0 %v324_v42  ;;  %v376_v22 = vsub.s32 0, %v4519_v13  ;;  %v388_v36 = vsub.s32 1, %v4519_v13 }
 0x10e   : > { %v377_v35 = vrot.slane %v276_v27, %v376_v22  ;;  %v389_v45 = vrot.slane %v276_v27, %v388_v36 }
 0x110   : > { %340 = vadd.xlane.f32.xlu1 %v325_v43 }
 0x18d   : > { %v327_v1 = vpop.xlane.xlu0 %326 }
 0x18e   : > { %v342_v2 = vmul.f32 0.0078125, %v327_v1 }
 0x190   : > { %v350_v3 = vadd.f32 1e-06, %v342_v2 }
 0x191   : > { %v329_v4 = vpop.xlane.xlu1 %328  ;;  %v331_v5 = vpop.xlane.xlu0 %330 }
 0x192   : > { %3915 = vrsqrt.f32 %v350_v3  ;;  %v343_v7 = vmul.f32 0.0078125, %v329_v4  ;;  %v344_v8 = vmul.f32 0.0078125, %v331_v5 }
 0x194   : > { %v351_v9 = vadd.f32 1e-06, %v343_v7  ;;  %v352_v10 = vadd.f32 1e-06, %v344_v8  ;;  %v446_v7 = vsub.s32 2, %v4519_v13 }
 0x195   : > { %v333_v11 = vpop.xlane.xlu1 %332  ;;  %v335_v12 = vpop.xlane.xlu0 %334 }
 0x196   : > { %3917 = vrsqrt.f32 %v351_v9  ;;  %v345_v14 = vmul.f32 0.0078125, %v333_v11  ;;  %v346_v15 = vmul.f32 0.0078125, %v335_v12 }
 0x197   : > { %3919 = vrsqrt.f32 %v352_v10 }
 0x198   : > { %v353_v18 = vadd.f32 1e-06, %v345_v14  ;;  %v354_v19 = vadd.f32 1e-06, %v346_v15 }
 0x199   : > { %v337_v20 = vpop.xlane.xlu1 %336  ;;  %v339_v21 = vpop.xlane.xlu0 %338 }
 0x19a   : > { %3921 = vrsqrt.f32 %v353_v18  ;;  %v347_v23 = vmul.f32 0.0078125, %v337_v20  ;;  %v348_v26 = vmul.f32 0.0078125, %v339_v21 }
 0x19b   : > { %3923 = vrsqrt.f32 %v354_v19 }
 0x19c   : > { %v3916_v28 = vpop.eup %3915  ;;  %v355_v29 = vadd.f32 1e-06, %v347_v23  ;;  %v356_v30 = vadd.f32 1e-06, %v348_v26 }
 0x19d   : > { %v341_v31 = vpop.xlane.xlu1 %340  ;;  %v366_v34 = vmul.f32 %v3916_v28, %v4486_v16 }
 0x19e   : > { %3925 = vrsqrt.f32 %v355_v29  ;;  %v349_v37 = vmul.f32 0.0078125, %v341_v31 }
 0x19f   : > { %3927 = vrsqrt.f32 %v356_v30  ;;  %v378_v44 = vmul.f32 %v377_v35, %v366_v34 }
 0x1a0   : > { %v3918_v38 = vpop.eup %3917  ;;  %v357_v39 = vadd.f32 1e-06, %v349_v37 }
 0x1a1   : > { %v3920_v42 = vpop.eup %3919  ;;  %v367_v43 = vmul.f32 %v3918_v38, %v4494_v24  ;;  %v390_v50 = vadd.f32 %v389_v45, %v378_v44 }
 0x1a2   : > { %3929 = vrsqrt.f32 %v357_v39  ;;  %v368_v46 = vmul.f32 %v3920_v42, %v4488_v17 }
 0x1a3   : > { %v379_v47 = vmul.f32 %v377_v35, %v367_v43 }
 0x1a4   : > { %v3922_v16 = vpop.eup %3921  ;;  %v380_v48 = vmul.f32 %v377_v35, %v368_v46 }
 0x1a5   : > { %v3924_v49 = vpop.eup %3923  ;;  %v391_v51 = vadd.f32 %v389_v45, %v379_v47  ;;  %v369_v52 = vmul.f32 %v3922_v16, %v4496_v25 }
 0x1a6   : > { %v370_v53 = vmul.f32 %v3924_v49, %v4502_v32  ;;  %v392_v57 = vadd.f32 %v389_v45, %v380_v48 }
 0x1a7   : > { %v398_v54 = vpack.c.bf16 %v391_v51, %v390_v50  ;;  %v381_v55 = vmul.f32 %v377_v35, %v369_v52 }
 0x1a8   : > { %v3926_v56 = vpop.eup %3925  ;;  %v382_v59 = vmul.f32 %v377_v35, %v370_v53 }
 0x1a9   : > { %v3928_v24 = vpop.eup %3927  ;;  %612 = vmatmul.mubr.bf16.vlgmr.msra.gmra.mrb[0].mxu0 %v398_v54  ;;  %3522 = vmatprep.mubr.bf16.mxu1 %v398_v54  ;;  %v393_v58 = vadd.f32 %v389_v45, %v381_v55  ;;  %v371_v17 = vmul.f32 %v3926_v56, %v4504_v33 }
 0x1aa   : > { %621 = vmatprep.mubr.bf16.mxu0 %v4251_v63  ;;  %v372_v60 = vmul.f32 %v3928_v24, %v4510_v40  ;;  %v394_v32 = vadd.f32 %v389_v45, %v382_v59  ;;  %v4252_v40 = vmov 0.0  }
 0x1ab   : > { %v399_v61 = vpack.c.bf16 %v393_v58, %v392_v57  ;;  %v383_v62 = vmul.f32 %v377_v35, %v371_v17  ;;  %3530 = vmatprep.subr.bf16.mxu1 %v4252_v40  ;;  %3554 = vmatprep.subr.bf16.mxu0 %v4252_v40 }
 0x1ac   : > { %v3930_v25 = vpop.eup %3929  ;;  %v384_v2 = vmul.f32 %v377_v35, %v372_v60 }
 0x1ad   : > { %3523 = vmatmul.mubr.bf16.vlgmr.msra.gmra.mrb[0].mxu1 %v399_v61  ;;  %v395_v0 = vadd.f32 %v389_v45, %v383_v62  ;;  %v373_v1 = vmul.f32 %v3930_v25, %v4512_v41  ;;  %v434_v41 = vld [vmem:[%s5142_s2] sm:$0x7] }
 0x1ae   : > { %v396_v5 = vadd.f32 %v389_v45, %v384_v2  ;;  %v4553_v9 = vrot.slane %v434_v41, %v388_v36  ;;  %v447_v18 = vrot.slane %v434_v41, %v446_v7 }
 0x1af   : > { %v400_v3 = vpack.c.bf16 %v395_v0, %v394_v32  ;;  %v385_v4 = vmul.f32 %v377_v35, %v373_v1 }
 0x1b1   : > { %622 = vmatmul.mubr.bf16.gmra.mrb[4].mxu0 %v399_v61  ;;  %3526 = vmatprep.mubr.bf16.mxu1 %v400_v3  ;;  %v397_v33 = vadd.f32 %v389_v45, %v385_v4 }
 0x1b2   : > { %631 = vmatprep.mubr.bf16.mxu0 %v4251_v63 }
 0x1b3   : > { %v401_v6 = vpack.c.bf16 %v397_v33, %v396_v5 }
 0x1b5   : > { %3527 = vmatmul.mubr.bf16.gmra.mrb[4].mxu1 %v401_v6 }
 0x1b6   : > { %3532 = vmatprep.mubr.msk.bf16.mxu1 %vm4253_vm0, %v4252_v40 }
 0x1b9   : > { %632 = vmatmul.mubr.bf16.gmra.mrb[8].mxu0 %v400_v3 }
 0x1ba   : > { %641 = vmatprep.mubr.bf16.mxu0 %v4251_v63  ;;  %v4550_v63 = vrot.slane %v434_v41, %v376_v22 }
 0x1c1   : > { %642 = vmatmul.mubr.bf16.gmra.mrb[12].mxu0 %v401_v6 }
 0x1c2   : > { %3556 = vmatprep.mubr.msk.bf16.mxu0 %vm4253_vm0, %v4252_v40 }
 0x27c   : > { %v613_v8 = vpop.f32.mrb[0].mxu0 }
 0x27d   : > { %v614_v10 = vadd.f32 %v613_v8, %v4550_v63  ;;  %v615_v11 = vpop.f32.mrb[1].mxu0 }
 0x27e   : > { %v617_v12 = vpop.f32.mrb[2].mxu0  ;;  %v616_v19 = vadd.f32 %v615_v11, %v4553_v9 }
 0x27f   : > { %v618_v14 = vadd.f32 %v617_v12, %v4550_v63  ;;  %v619_v15 = vpop.f32.mrb[3].mxu0 }
 0x280   : > { %v620_v20 = vadd.f32 %v619_v15, %v4553_v9  ;;  %v3524_v21 = vpop.f32.mrb[0].mxu1 }
 0x281   : > { %v4561_v22 = vpack.c.bf16 %v618_v14, %v614_v10  ;;  %v686_v23 = vpop.f32.mrb[1].mxu1  ;;  %v695_v28 = vadd.f32 %v3524_v21, %v447_v18 }
 0x282   : > { %v4563_v26 = vpack.c.bf16 %v620_v20, %v616_v19  ;;  %v3525_v27 = vpop.f32.mrb[2].mxu1  ;;  %v687_v31 = vadd.f32 %v686_v23, %v447_v18 }
 0x283   : > { %v698_v29 = vadd.f32 %v3525_v27, %v447_v18  ;;  %v689_v30 = vpop.f32.mrb[3].mxu1 }
 0x284   : > { %v690_v34 = vadd.f32 %v689_v30, %v447_v18  ;;  %v623_v35 = vpop.f32.mrb[4].mxu0  ;;  %v734_v36 = vsel %vm729_vm1, %v4563_v26, 0 }
 0x285   : > { %v4567_v37 = vpack.c.bf16 %v698_v29, %v695_v28  ;;  %v624_v38 = vadd.f32 %v623_v35, %v4550_v63  ;;  %v625_v39 = vpop.f32.mrb[5].mxu0  ;;  %3531 = vmatpush3.bf16.xpose.msra.mxu1 %v734_v36 }
 0x286   : > { %v4570_v42 = vpack.c.bf16 %v690_v34, %v687_v31  ;;  %v627_v43 = vpop.f32.mrb[6].mxu0  ;;  %3536 = vmatprep.subr.bf16.mxu1 %v4252_v40  ;;  %v626_v46 = vadd.f32 %v625_v39, %v4553_v9 }
 0x287   : > { %v628_v44 = vadd.f32 %v627_v43, %v4550_v63  ;;  %v629_v45 = vpop.f32.mrb[7].mxu0 }
 0x288   : > { %v630_v47 = vadd.f32 %v629_v45, %v4553_v9  ;;  %v3528_v16 = vpop.f32.mrb[4].mxu1  ;;  %3555 = vmatpush3.bf16.msra.mxu0 %v4570_v42 }
 0x289   : > { %v4577_v48 = vpack.c.bf16 %v628_v44, %v624_v38  ;;  %v711_v49 = vadd.f32 %v3528_v16, %v447_v18  ;;  %v702_v50 = vpop.f32.mrb[5].mxu1  ;;  %3566 = vmatprep.subr.bf16.mxu0 %v4252_v40 }
 0x28a   : > { %v4580_v51 = vpack.c.bf16 %v630_v47, %v626_v46  ;;  %v703_v52 = vadd.f32 %v702_v50, %v447_v18  ;;  %v3529_v53 = vpop.f32.mrb[6].mxu1 }
 0x28b   : > { %v714_v54 = vadd.f32 %v3529_v53, %v447_v18  ;;  %v705_v55 = vpop.f32.mrb[7].mxu1 }
 0x28c   : > { %v706_v56 = vadd.f32 %v705_v55, %v447_v18  ;;  %v633_v57 = vpop.f32.mrb[8].mxu0  ;;  %3533 = vmatmul.mubr.msk.bf16.vlgmr.msra.gmra.mrb[8].mxu1 %vm729_vm1, %v4561_v22  ;;  %v781_v24 = vsel %vm729_vm1, %v4580_v51, 0 }
 0x28d   : > { %v4586_v58 = vpack.c.bf16 %v714_v54, %v711_v49  ;;  %v634_v17 = vadd.f32 %v633_v57, %v4550_v63  ;;  %v635_v59 = vpop.f32.mrb[9].mxu0  ;;  %3537 = vmatpush3.bf16.xpose.msra.mxu1 %v781_v24  ;;  %3538 = vmatprep.mubr.msk.bf16.mxu1 %vm4253_vm0, %v4252_v40 }
 0x28e   : > { %v4591_v60 = vpack.c.bf16 %v706_v56, %v703_v52  ;;  %v637_v61 = vpop.f32.mrb[10].mxu0  ;;  %3542 = vmatprep.subr.bf16.mxu1 %v4252_v40  ;;  %v636_v32 = vadd.f32 %v635_v59, %v4553_v9 }
 0x28f   : > { %v638_v62 = vadd.f32 %v637_v61, %v4550_v63  ;;  %v639_v25 = vpop.f32.mrb[11].mxu0 }
 0x290   : > { %v640_v0 = vadd.f32 %v639_v25, %v4553_v9 }
 0x291   : > { %v4597_v1 = vpack.c.bf16 %v638_v62, %v634_v17 }
 0x292   : > { %v4599_v2 = vpack.c.bf16 %v640_v0, %v636_v32 }
 0x294   : > { %v643_v3 = vpop.f32.mrb[12].mxu0  ;;  %3539 = vmatmul.mubr.msk.bf16.vlgmr.msra.gmra.mrb[12].mxu1 %vm729_vm1, %v4577_v48  ;;  %v828_v4 = vsel %vm729_vm1, %v4599_v2, 0 }
 0x295   : > { %v644_v5 = vadd.f32 %v643_v3, %v4550_v63  ;;  %v645_v33 = vpop.f32.mrb[13].mxu0  ;;  %3543 = vmatpush3.bf16.xpose.msra.mxu1 %v828_v4  ;;  %3544 = vmatprep.mubr.msk.bf16.mxu1 %vm4253_vm0, %v4252_v40 }
 0x296   : > { %v647_v6 = vpop.f32.mrb[14].mxu0  ;;  %3548 = vmatprep.subr.bf16.mxu1 %v4252_v40  ;;  %v646_v10 = vadd.f32 %v645_v33, %v4553_v9 }
 0x297   : > { %v648_v41 = vadd.f32 %v647_v6, %v4550_v63  ;;  %v649_v8 = vpop.f32.mrb[15].mxu0 }
 0x298   : > { %v650_v11 = vadd.f32 %v649_v8, %v4553_v9 }
 0x299   : > { %v4612_v12 = vpack.c.bf16 %v648_v41, %v644_v5 }
 0x29a   : > { %v4614_v14 = vpack.c.bf16 %v650_v11, %v646_v10 }
 0x29c   : > { %3545 = vmatmul.mubr.msk.bf16.vlgmr.msra.gmra.mrb[16].mxu1 %vm729_vm1, %v4597_v1  ;;  %v875_v15 = vsel %vm729_vm1, %v4614_v14, 0 }
 0x29d   : > { %3549 = vmatpush3.bf16.xpose.msra.mxu1 %v875_v15  ;;  %3550 = vmatprep.mubr.msk.bf16.mxu1 %vm4253_vm0, %v4252_v40 }
 0x29e   : > { %3560 = vmatprep.subr.bf16.mxu1 %v4252_v40 }
 0x2a4   : > { %3551 = vmatmul.mubr.msk.bf16.vlgmr.msra.gmra.mrb[20].mxu1 %vm729_vm1, %v4612_v12 }
 0x2a5   : > { %3561 = vmatpush3.bf16.msra.mxu1 %v4567_v37  ;;  %3562 = vmatprep.mubr.msk.bf16.mxu1 %vm4253_vm0, %v4252_v40 }
 0x2a6   : > { %3572 = vmatprep.subr.bf16.mxu1 %v4252_v40 }
 0x35f   : > { %v4629_v63 = vpop.f32.mrb[8].mxu1 }
 0x360   : > { %v3534_v9 = vpop.f32.mrb[9].mxu1  ;;  %v919_v4 = vsel %vm918_vm2, %v4629_v63, -inf }
 0x361   : > { %v4631_v18 = vpop.f32.mrb[10].mxu1 }
 0x362   : > { %v3535_v19 = vpop.f32.mrb[11].mxu1  ;;  %v922_v6 = vsel %vm918_vm2, %v4631_v18, -inf }
 0x367   : > { %v817_v20 = vpop.f32.mrb[12].mxu1 }
 0x368   : > { %v3540_v21 = vpop.f32.mrb[13].mxu1  ;;  %v925_v23 = vsel %vm918_vm2, %v817_v20, -inf }
 0x369   : > { %926 = vmax.xlane.f32.xlu0 %v925_v23  ;;  %v820_v27 = vpop.f32.mrb[14].mxu1 }
 0x36a   : > { %v3541_v28 = vpop.f32.mrb[15].mxu1  ;;  %v928_v29 = vsel %vm918_vm2, %v820_v27, -inf }
 0x36b   : > { %929 = vmax.xlane.f32.xlu1 %v928_v29 }
 0x36f   : > { %v4635_v30 = vpop.f32.mrb[16].mxu1 }
 0x370   : > { %v3546_v31 = vpop.f32.mrb[17].mxu1  ;;  %v931_v5 = vsel %vm918_vm2, %v4635_v30, -inf }
 0x371   : > { %v4637_v34 = vpop.f32.mrb[18].mxu1 }
 0x372   : > { %v3547_v35 = vpop.f32.mrb[19].mxu1  ;;  %v934_v33 = vsel %vm918_vm2, %v4637_v34, -inf }
 0x377   : > { %v911_v36 = vpop.f32.mrb[20].mxu1 }
 0x378   : > { %v3552_v38 = vpop.f32.mrb[21].mxu1  ;;  %v937_v39 = vsel %vm918_vm2, %v911_v36, -inf }
 0x379   : > { %938 = vmax.xlane.f32.xlu0 %v937_v39  ;;  %v914_v43 = vpop.f32.mrb[22].mxu1 }
 0x37a   : > { %v3553_v44 = vpop.f32.mrb[23].mxu1  ;;  %v940_v45 = vsel %vm918_vm2, %v914_v43, -inf }
 0x37b   : > { %941 = vmax.xlane.f32.xlu1 %v940_v45 }
 0x3f6   : > { %v927_v46 = vpop.xlane.xlu0 %926 }
 0x3f7   : > { %v945_v47 = vsub.f32 %v817_v20, %v927_v46 }
 0x3f8   : > { %v930_v16 = vpop.xlane.xlu1 %929 }
 0x3f9   : > { %v955_v49 = vmul.f32 1.442695, %v945_v47  ;;  %v946_v50 = vsub.f32 %v820_v27, %v930_v16 }
 0x3fb   : > { %3931 = vpow2.f32 %v955_v49  ;;  %v957_v52 = vmul.f32 1.442695, %v946_v50 }
 0x3fd   : > { %3933 = vpow2.f32 %v957_v52 }
 0x405   : > { %v3932_v53 = vpop.eup %3931 }
 0x406   : > { %v939_v54 = vpop.xlane.xlu0 %938  ;;  %v973_v55 = vsel %vm918_vm2, %v3932_v53, 0.0 }
 0x407   : > { %v3934_v56 = vpop.eup %3933  ;;  %v949_v57 = vsub.f32 %v911_v36, %v939_v54  ;;  %974 = vadd.xlane.f32.xlu0 %v973_v55 }
 0x408   : > { %v942_v24 = vpop.xlane.xlu1 %941  ;;  %v976_v17 = vsel %vm918_vm2, %v3934_v56, 0.0 }
 0x409   : > { %v963_v59 = vmul.f32 1.442695, %v949_v57  ;;  %v950_v61 = vsub.f32 %v914_v43, %v942_v24  ;;  %977 = vadd.xlane.f32.xlu1 %v976_v17 }
 0x40b   : > { %3935 = vpow2.f32 %v963_v59  ;;  %v965_v62 = vmul.f32 1.442695, %v950_v61 }
 0x40d   : > { %3937 = vpow2.f32 %v965_v62 }
 0x415   : > { %v3936_v25 = vpop.eup %3935 }
 0x416   : > { %v985_v32 = vsel %vm918_vm2, %v3936_v25, 0.0 }
 0x417   : > { %v3938_v0 = vpop.eup %3937  ;;  %986 = vadd.xlane.f32.xlu0 %v985_v32 }
 0x418   : > { %v988_v3 = vsel %vm918_vm2, %v3938_v0, 0.0 }
 0x419   : > { %989 = vadd.xlane.f32.xlu1 %v988_v3 }
 0x42a   : > { %1249 = vrot.lane.b32.xlu1 %v4577_v48, %s4254_s12 }
 0x42d   : > { %1252 = vrot.lane.b32.xlu0 %v4580_v51, %s4254_s12 }
 0x42e   : > { %1358 = vrot.lane.b32.xlu1 %v4614_v14, %s4254_s12 }
 0x432   : > { %1355 = vrot.lane.b32.xlu1 %v4612_v12, %s4254_s12 }
 0x44c   : > { %920 = vmax.xlane.f32.xlu0 %v919_v4 }
 0x450   : > { %932 = vmax.xlane.f32.xlu0 %v931_v5 }
 0x454   : > { %935 = vmax.xlane.f32.xlu0 %v934_v33 }
 0x456   : > { %923 = vmax.xlane.f32.xlu1 %v922_v6 }
 0x494   : > { %v975_v41 = vpop.xlane.xlu0 %974 }
 0x495   : > { %3939 = vrcp.f32 %v975_v41 }
 0x496   : > { %v978_v8 = vpop.xlane.xlu1 %977 }
 0x497   : > { %3941 = vrcp.f32 %v978_v8 }
 0x49f   : > { %v3940_v10 = vpop.eup %3939 }
 0x4a0   : > { %v1001_v15 = vmul.f32 %v3940_v10, %v3932_v53 }
 0x4a1   : > { %v3942_v11 = vpop.eup %3941 }
 0x4a2   : > { %v1002_v9 = vmul.f32 %v3942_v11, %v3934_v56 }
 0x4a4   : > { %v987_v19 = vpop.xlane.xlu0 %986  ;;  %v1008_v20 = vpack.c.bf16 %v1002_v9, %v1001_v15 }
 0x4a5   : > { %3943 = vrcp.f32 %v987_v19 }
 0x4a6   : > { %3563 = vmatmul.mubr.msk.bf16.vlgmr.msra.gmra.mrb[24].mxu1 %vm918_vm2, %v1008_v20  ;;  %v990_v21 = vpop.xlane.xlu1 %989 }
 0x4a7   : > { %3573 = vmatpush3.bf16.msra.mxu1 %v4586_v58  ;;  %3945 = vrcp.f32 %v990_v21  ;;  %3574 = vmatprep.mubr.msk.bf16.mxu1 %vm4253_vm0, %v4252_v40 }
 0x4a8   : > { %3584 = vmatprep.subr.bf16.mxu1 %v4252_v40  ;;  %v1253_v31 = vpop.permute.xlu0 %1252 }
 0x4a9   : > { %v1258_v38 = vsel %vm729_vm1, %v1253_v31, 0 }
 0x4aa   : > { %v1250_v36 = vpop.permute.xlu1 %1249 }
 0x4ae   : > { %v1359_v39 = vpop.permute.xlu1 %1358 }
 0x4af   : > { %v3944_v23 = vpop.eup %3943  ;;  %v1364_v43 = vsel %vm729_vm1, %v1359_v39, 0 }
 0x4b0   : > { %v1005_v28 = vmul.f32 %v3944_v23, %v3936_v25 }
 0x4b1   : > { %v3946_v27 = vpop.eup %3945 }
 0x4b2   : > { %v1006_v29 = vmul.f32 %v3946_v27, %v3938_v0  ;;  %v1356_v44 = vpop.permute.xlu1 %1355 }
 0x4b4   : > { %v1010_v35 = vpack.c.bf16 %v1006_v29, %v1005_v28 }
 0x4b6   : > { %3575 = vmatmul.mubr.msk.bf16.vlgmr.msra.gmra.mrb[28].mxu1 %vm918_vm2, %v1010_v35 }
 0x4b7   : > { %3585 = vmatpush3.bf16.xpose.msra.mxu1 %v1258_v38  ;;  %3586 = vmatprep.mubr.msk.bf16.mxu1 %vm4253_vm0, %v4252_v40 }
 0x4b8   : > { %3596 = vmatprep.subr.bf16.mxu1 %v4252_v40 }
 0x4be   : > { %3587 = vmatmul.mubr.msk.bf16.vlgmr.msra.gmra.mrb[32].mxu1 %vm729_vm1, %v1250_v36 }
 0x4bf   : > { %3597 = vmatpush3.bf16.xpose.msra.mxu1 %v1364_v43  ;;  %3598 = vmatprep.mubr.msk.bf16.mxu1 %vm4253_vm0, %v4252_v40 }
 0x4c0   : > { %3608 = vmatprep.subr.bf16.mxu1 %v4252_v40 }
 0x4c6   : > { %3599 = vmatmul.mubr.msk.bf16.vlgmr.msra.gmra.mrb[36].mxu1 %vm729_vm1, %v1356_v44 }
 0x4c7   : > { %3610 = vmatprep.mubr.msk.bf16.mxu1 %vm4253_vm0, %v4252_v40 }
 0x4d9   : > { %v921_v45 = vpop.xlane.xlu0 %920 }
 0x4da   : > { %v943_v46 = vsub.f32 %v4629_v63, %v921_v45 }
 0x4dc   : > { %v951_v47 = vmul.f32 1.442695, %v943_v46 }
 0x4dd   : > { %v933_v16 = vpop.xlane.xlu0 %932 }
 0x4de   : > { %3947 = vpow2.f32 %v951_v47  ;;  %v947_v49 = vsub.f32 %v4635_v30, %v933_v16 }
 0x4e0   : > { %v959_v50 = vmul.f32 1.442695, %v947_v49 }
 0x4e1   : > { %v936_v52 = vpop.xlane.xlu0 %935 }
 0x4e2   : > { %3949 = vpow2.f32 %v959_v50  ;;  %v948_v53 = vsub.f32 %v4637_v34, %v936_v52 }
 0x4e3   : > { %v924_v54 = vpop.xlane.xlu1 %923 }
 0x4e4   : > { %v944_v55 = vsub.f32 %v4631_v18, %v924_v54  ;;  %v961_v56 = vmul.f32 1.442695, %v948_v53 }
 0x4e6   : > { %v953_v57 = vmul.f32 1.442695, %v944_v55 }
 0x4e8   : > { %v3948_v24 = vpop.eup %3947  ;;  %3951 = vpow2.f32 %v953_v57 }
 0x4e9   : > { %v967_v17 = vsel %vm918_vm2, %v3948_v24, 0.0  ;;  %3953 = vpow2.f32 %v961_v56 }
 0x4ea   : > { %968 = vadd.xlane.f32.xlu0 %v967_v17 }
 0x4ec   : > { %v3950_v63 = vpop.eup %3949 }
 0x4ed   : > { %v979_v59 = vsel %vm918_vm2, %v3950_v63, 0.0 }
 0x4ee   : > { %980 = vadd.xlane.f32.xlu0 %v979_v59 }
 0x4f2   : > { %v3952_v30 = vpop.eup %3951 }
 0x4f3   : > { %v970_v61 = vsel %vm918_vm2, %v3952_v30, 0.0  ;;  %v3954_v62 = vpop.eup %3953 }
 0x4f4   : > { %971 = vadd.xlane.f32.xlu1 %v970_v61  ;;  %v982_v34 = vsel %vm918_vm2, %v3954_v62, 0.0 }
 0x4f8   : > { %983 = vadd.xlane.f32.xlu1 %v982_v34 }
 0x504   : > { %1199 = vrot.lane.b32.xlu0 %v4563_v26, %s4254_s12 }
 0x509   : > { %1196 = vrot.lane.b32.xlu1 %v4561_v22, %s4254_s12 }
 0x50d   : > { %1305 = vrot.lane.b32.xlu1 %v4599_v2, %s4254_s12 }
 0x511   : > { %1302 = vrot.lane.b32.xlu1 %v4597_v1, %s4254_s12 }
 0x577   : > { %v969_v4 = vpop.xlane.xlu0 %968 }
 0x578   : > { %3955 = vrcp.f32 %v969_v4 }
 0x579   : > { %v4695_v18 = vpop.f32.mrb[24].mxu1 }
 0x57a   : > { %v3564_v25 = vpop.f32.mrb[25].mxu1 }
 0x57b   : > { %v4697_v32 = vpop.f32.mrb[26].mxu1  ;;  %v981_v33 = vpop.xlane.xlu0 %980 }
 0x57c   : > { %v1188_v0 = vpack.c.bf16 %v4697_v32, %v4695_v18  ;;  %v3565_v3 = vpop.f32.mrb[27].mxu1 }
 0x57f   : > { %v1200_v45 = vpop.permute.xlu0 %1199 }
 0x580   : > { %v1205_v49 = vsel %vm729_vm1, %v1200_v45, 0 }
 0x581   : > { %v972_v5 = vpop.xlane.xlu1 %971 }
 0x582   : > { %3957 = vrcp.f32 %v972_v5  ;;  %v3956_v8 = vpop.eup %3955 }
 0x583   : > { %v999_v20 = vmul.f32 %v3956_v8, %v3948_v24 }
 0x585   : > { %v984_v6 = vpop.xlane.xlu1 %983 }
 0x586   : > { %3959 = vrcp.f32 %v984_v6 }
 0x587   : > { %3961 = vrcp.f32 %v981_v33 }
 0x589   : > { %v4701_v41 = vpop.f32.mrb[28].mxu1  ;;  %v1197_v47 = vpop.permute.xlu1 %1196 }
 0x58a   : > { %v3576_v10 = vpop.f32.mrb[29].mxu1 }
 0x58b   : > { %v4703_v11 = vpop.f32.mrb[30].mxu1 }
 0x58c   : > { %v3958_v15 = vpop.eup %3957  ;;  %v1190_v9 = vpack.c.bf16 %v4703_v11, %v4701_v41  ;;  %v3577_v19 = vpop.f32.mrb[31].mxu1 }
 0x58d   : > { %v1000_v21 = vmul.f32 %v3958_v15, %v3952_v30  ;;  %v1306_v56 = vpop.permute.xlu1 %1305 }
 0x58e   : > { %v1311_v57 = vsel %vm729_vm1, %v1306_v56, 0 }
 0x58f   : > { %v1007_v23 = vpack.c.bf16 %v1000_v21, %v999_v20 }
 0x590   : > { %v3960_v27 = vpop.eup %3959 }
 0x591   : > { %3557 = vmatmul.mubr.msk.bf16.vlgmr.msra.gmra.mrb[16].mxu0 %vm918_vm2, %v1007_v23  ;;  %v1294_v28 = vpop.f32.mrb[32].mxu1  ;;  %v3962_v29 = vpop.eup %3961  ;;  %v1004_v36 = vmul.f32 %v3960_v27, %v3954_v62 }
 0x592   : > { %3567 = vmatpush3.bf16.msra.mxu0 %v4591_v60  ;;  %v3588_v31 = vpop.f32.mrb[33].mxu1  ;;  %v1413_v35 = vsel %vm918_vm2, %v1294_v28, -inf  ;;  %3568 = vmatprep.mubr.msk.bf16.mxu0 %vm4253_vm0, %v4252_v40  ;;  %v1003_v44 = vmul.f32 %v3962_v29, %v3950_v63  ;;  %v1303_v24 = vpop.permute.xlu1 %1302 }
 0x593   : > { %1414 = vmax.xlane.f32.xlu0 %v1413_v35  ;;  %v1297_v38 = vpop.f32.mrb[34].mxu1  ;;  %3578 = vmatprep.subr.bf16.mxu0 %v4252_v40 }
 0x594   : > { %v3589_v39 = vpop.f32.mrb[35].mxu1  ;;  %v1416_v43 = vsel %vm918_vm2, %v1297_v38, -inf  ;;  %v1009_v46 = vpack.c.bf16 %v1004_v36, %v1003_v44 }
 0x595   : > { %1417 = vmax.xlane.f32.xlu1 %v1416_v43 }
 0x599   : > { %3569 = vmatmul.mubr.msk.bf16.vlgmr.msra.gmra.mrb[20].mxu0 %vm918_vm2, %v1009_v46  ;;  %v1400_v16 = vpop.f32.mrb[36].mxu1 }
 0x59a   : > { %v3600_v50 = vpop.f32.mrb[37].mxu1  ;;  %v1425_v52 = vsel %vm918_vm2, %v1400_v16, -inf  ;;  %3580 = vmatprep.mubr.msk.bf16.mxu0 %vm4253_vm0, %v4252_v40 }
 0x59b   : > { %3579 = vmatpush3.bf16.xpose.msra.mxu0 %v1205_v49  ;;  %1426 = vmax.xlane.f32.xlu0 %v1425_v52  ;;  %v1403_v53 = vpop.f32.mrb[38].mxu1 }
 0x59c   : > { %v3601_v54 = vpop.f32.mrb[39].mxu1  ;;  %3590 = vmatprep.subr.bf16.mxu0 %v4252_v40  ;;  %v1428_v55 = vsel %vm918_vm2, %v1403_v53, -inf }
 0x59f   : > { %1429 = vmax.xlane.f32.xlu0 %v1428_v55 }
 0x5a2   : > { %3581 = vmatmul.mubr.msk.bf16.vlgmr.msra.gmra.mrb[24].mxu0 %vm729_vm1, %v1197_v47 }
 0x5a3   : > { %3591 = vmatpush3.bf16.xpose.msra.mxu0 %v1311_v57  ;;  %3592 = vmatprep.mubr.msk.bf16.mxu0 %vm4253_vm0, %v4252_v40 }
 0x5a4   : > { %3602 = vmatprep.subr.bf16.mxu0 %v4252_v40 }
 0x5aa   : > { %3593 = vmatmul.mubr.msk.bf16.vlgmr.msra.gmra.mrb[28].mxu0 %vm729_vm1, %v1303_v24 }
 0x5ab   : > { %3604 = vmatprep.mubr.msk.bf16.mxu0 %vm4253_vm0, %v4252_v40 }
 0x620   : > { %v1415_v17 = vpop.xlane.xlu0 %1414 }
 0x621   : > { %v1433_v63 = vsub.f32 %v1294_v28, %v1415_v17 }
 0x622   : > { %v1418_v59 = vpop.xlane.xlu1 %1417 }
 0x623   : > { %v1443_v30 = vmul.f32 1.442695, %v1433_v63  ;;  %v1434_v61 = vsub.f32 %v1297_v38, %v1418_v59 }
 0x625   : > { %3963 = vpow2.f32 %v1443_v30  ;;  %v1445_v62 = vmul.f32 1.442695, %v1434_v61 }
 0x627   : > { %3965 = vpow2.f32 %v1445_v62 }
 0x628   : > { %v1427_v34 = vpop.xlane.xlu0 %1426 }
 0x629   : > { %v1437_v25 = vsub.f32 %v1400_v16, %v1427_v34 }
 0x62b   : > { %v1451_v3 = vmul.f32 1.442695, %v1437_v25 }
 0x62c   : > { %v1430_v15 = vpop.xlane.xlu0 %1429 }
 0x62d   : > { %3967 = vpow2.f32 %v1451_v3  ;;  %v1438_v19 = vsub.f32 %v1403_v53, %v1430_v15 }
 0x62f   : > { %v3964_v4 = vpop.eup %3963  ;;  %v1453_v20 = vmul.f32 1.442695, %v1438_v19 }
 0x630   : > { %v1461_v5 = vsel %vm918_vm2, %v3964_v4, 0.0 }
 0x631   : > { %v3966_v33 = vpop.eup %3965  ;;  %1462 = vadd.xlane.f32.xlu0 %v1461_v5  ;;  %3969 = vpow2.f32 %v1453_v20 }
 0x632   : > { %v1464_v6 = vsel %vm918_vm2, %v3966_v33, 0.0 }
 0x633   : > { %1465 = vadd.xlane.f32.xlu1 %v1464_v6 }
 0x637   : > { %v4731_v8 = vpop.eup %3967 }
 0x638   : > { %v1473_v10 = vsel %vm918_vm2, %v4731_v8, 0.0 }
 0x639   : > { %1474 = vadd.xlane.f32.xlu0 %v1473_v10 }
 0x63b   : > { %v3970_v21 = vpop.eup %3969 }
 0x63c   : > { %v1476_v35 = vsel %vm918_vm2, %v3970_v21, 0.0 }
 0x644   : > { %1644 = vrot.lane.b32.xlu1 %v4586_v58, %s4254_s12 }
 0x64f   : > { %1548 = vrot.lane.b32.xlu0 %v4567_v37, %s4254_s12 }
 0x653   : > { %1930 = vrot.lane.b32.xlu0 %v4580_v51, %s4255_s13 }
 0x657   : > { %1981 = vrot.lane.b32.xlu0 %v4599_v2, %s4255_s13 }
 0x65b   : > { %2032 = vrot.lane.b32.xlu0 %v4614_v14, %s4255_s13 }
 0x664   : > { %v4745_v23 = vpop.f32.mrb[16].mxu0 }
 0x665   : > { %v3558_v27 = vpop.f32.mrb[17].mxu0 }
 0x666   : > { %v4747_v28 = vpop.f32.mrb[18].mxu0 }
 0x667   : > { %v1187_v29 = vpack.c.bf16 %v4747_v28, %v4745_v23  ;;  %v3559_v31 = vpop.f32.mrb[19].mxu0 }
 0x668   : > { %1477 = vadd.xlane.f32.xlu1 %v1476_v35 }
 0x66c   : > { %v4752_v36 = vpop.f32.mrb[20].mxu0 }
 0x66d   : > { %v3570_v38 = vpop.f32.mrb[21].mxu0 }
 0x66e   : > { %v4754_v39 = vpop.f32.mrb[22].mxu0 }
 0x66f   : > { %v1189_v43 = vpack.c.bf16 %v4754_v39, %v4752_v36  ;;  %v3571_v44 = vpop.f32.mrb[23].mxu0 }
 0x675   : > { %v1241_v45 = vpop.f32.mrb[24].mxu0 }
 0x676   : > { %v3582_v46 = vpop.f32.mrb[25].mxu0  ;;  %v1407_v49 = vsel %vm918_vm2, %v1241_v45, -inf }
 0x677   : > { %v4758_v47 = vpop.f32.mrb[26].mxu0 }
 0x678   : > { %v3583_v16 = vpop.f32.mrb[27].mxu0  ;;  %v1410_v57 = vsel %vm918_vm2, %v4758_v47, -inf }
 0x679   : > { %1879 = vrot.lane.b32.xlu1 %v4563_v26, %s4255_s13 }
 0x67a   : > { %1408 = vmax.xlane.f32.xlu0 %v1407_v49 }
 0x67d   : > { %v1347_v50 = vpop.f32.mrb[28].mxu0  ;;  %1877 = vrot.lane.b32.xlu1 %v4561_v22, %s4255_s13 }
 0x67e   : > { %v3594_v52 = vpop.f32.mrb[29].mxu0  ;;  %v1419_v53 = vsel %vm918_vm2, %v1347_v50, -inf }
 0x67f   : > { %v4766_v54 = vpop.f32.mrb[30].mxu0  ;;  %1420 = vmax.xlane.f32.xlu0 %v1419_v53 }
 0x680   : > { %v3595_v55 = vpop.f32.mrb[31].mxu0  ;;  %v1422_v56 = vsel %vm918_vm2, %v4766_v54, -inf }
 0x681   : > { %1928 = vrot.lane.b32.xlu1 %v4577_v48, %s4255_s13 }
 0x683   : > { %1423 = vmax.xlane.f32.xlu0 %v1422_v56 }
 0x685   : > { %1979 = vrot.lane.b32.xlu1 %v4597_v1, %s4255_s13 }
 0x689   : > { %2030 = vrot.lane.b32.xlu1 %v4612_v12, %s4255_s13 }
 0x6ad   : > { %1411 = vmax.xlane.f32.xlu1 %v1410_v57 }
 0x6be   : > { %v1463_v24 = vpop.xlane.xlu0 %1462 }
 0x6bf   : > { %3971 = vrcp.f32 %v1463_v24 }
 0x6c0   : > { %v1466_v17 = vpop.xlane.xlu1 %1465 }
 0x6c1   : > { %3973 = vrcp.f32 %v1466_v17 }
 0x6c4   : > { %v1645_v3 = vpop.permute.xlu1 %1644 }
 0x6c6   : > { %v1475_v63 = vpop.xlane.xlu0 %1474 }
 0x6c7   : > { %3975 = vrcp.f32 %v1475_v63 }
 0x6c9   : > { %v3972_v59 = vpop.eup %3971 }
 0x6ca   : > { %v1549_v30 = vpop.permute.xlu0 %1548  ;;  %v1489_v62 = vmul.f32 %v3972_v59, %v3964_v4 }
 0x6cb   : > { %v3974_v61 = vpop.eup %3973  ;;  %3609 = vmatpush3.bf16.msra.mxu1 %v1549_v30 }
 0x6cc   : > { %v1490_v34 = vmul.f32 %v3974_v61, %v3966_v33  ;;  %3620 = vmatprep.subr.bf16.mxu1 %v4252_v40 }
 0x6ce   : > { %v1496_v25 = vpack.c.bf16 %v1490_v34, %v1489_v62  ;;  %v1931_v6 = vpop.permute.xlu0 %1930 }
 0x6d0   : > { %3611 = vmatmul.mubr.msk.bf16.vlgmr.msra.gmra.mrb[40].mxu1 %vm918_vm2, %v1496_v25 }
 0x6d1   : > { %3621 = vmatpush3.bf16.msra.mxu1 %v1645_v3  ;;  %3622 = vmatprep.mubr.msk.bf16.mxu1 %vm4253_vm0, %v4252_v40  ;;  %v3976_v15 = vpop.eup %3975 }
 0x6d2   : > { %3650 = vmatprep.subr.bf16.mxu1 %v4252_v40  ;;  %v1982_v10 = vpop.permute.xlu0 %1981  ;;  %v1493_v33 = vmul.f32 %v3976_v15, %v4731_v8 }
 0x6d6   : > { %v2033_v27 = vpop.permute.xlu0 %2032 }
 0x6d7   : > { %v2038_v17 = vsel %vm729_vm1, %v2033_v27, 0 }
 0x6f5   : > { %v1478_v5 = vpop.xlane.xlu1 %1477 }
 0x6f6   : > { %3977 = vrcp.f32 %v1478_v5 }
 0x6f9   : > { %v1880_v20 = vpop.permute.xlu1 %1879 }
 0x6fa   : > { %v1885_v35 = vsel %vm729_vm1, %v1880_v20, 0 }
 0x6fd   : > { %v1878_v16 = vpop.permute.xlu1 %1877 }
 0x700   : > { %v3978_v4 = vpop.eup %3977 }
 0x701   : > { %v1494_v19 = vmul.f32 %v3978_v4, %v3970_v21  ;;  %v1936_v21 = vsel %vm729_vm1, %v1931_v6, 0  ;;  %v1929_v53 = vpop.permute.xlu1 %1928 }
 0x703   : > { %v1498_v31 = vpack.c.bf16 %v1494_v19, %v1493_v33 }
 0x705   : > { %3623 = vmatmul.mubr.msk.bf16.vlgmr.msra.gmra.mrb[44].mxu1 %vm918_vm2, %v1498_v31  ;;  %v1980_v57 = vpop.permute.xlu1 %1979 }
 0x706   : > { %3651 = vmatpush3.bf16.xpose.msra.mxu1 %v1885_v35  ;;  %3652 = vmatprep.mubr.msk.bf16.mxu1 %vm4253_vm0, %v4252_v40 }
 0x707   : > { %v1409_v38 = vpop.xlane.xlu0 %1408  ;;  %3656 = vmatprep.subr.bf16.mxu1 %v4252_v40 }
 0x708   : > { %v1431_v44 = vsub.f32 %v1241_v45, %v1409_v38  ;;  %v1987_v45 = vsel %vm729_vm1, %v1982_v10, 0 }
 0x709   : > { %v2031_v63 = vpop.permute.xlu1 %2030 }
 0x70a   : > { %v1439_v46 = vmul.f32 1.442695, %v1431_v44 }
 0x70c   : > { %3979 = vpow2.f32 %v1439_v46  ;;  %v1421_v8 = vpop.xlane.xlu0 %1420 }
 0x70d   : > { %v1435_v49 = vsub.f32 %v1347_v50, %v1421_v8  ;;  %3653 = vmatmul.mubr.msk.bf16.vlgmr.msra.gmra.mrb[48].mxu1 %vm729_vm1, %v1878_v16 }
 0x70e   : > { %3657 = vmatpush3.bf16.xpose.msra.mxu1 %v1936_v21  ;;  %3658 = vmatprep.mubr.msk.bf16.mxu1 %vm4253_vm0, %v4252_v40 }
 0x70f   : > { %v1447_v52 = vmul.f32 1.442695, %v1435_v49  ;;  %3662 = vmatprep.subr.bf16.mxu1 %v4252_v40 }
 0x710   : > { %v1424_v59 = vpop.xlane.xlu0 %1423 }
 0x711   : > { %3981 = vpow2.f32 %v1447_v52  ;;  %v1436_v30 = vsub.f32 %v4766_v54, %v1424_v59 }
 0x713   : > { %v1449_v34 = vmul.f32 1.442695, %v1436_v30 }
 0x715   : > { %3659 = vmatmul.mubr.msk.bf16.vlgmr.msra.gmra.mrb[52].mxu1 %vm729_vm1, %v1929_v53 }
 0x716   : > { %v4796_v55 = vpop.eup %3979  ;;  %3663 = vmatpush3.bf16.xpose.msra.mxu1 %v1987_v45  ;;  %3664 = vmatprep.mubr.msk.bf16.mxu1 %vm4253_vm0, %v4252_v40 }
 0x717   : > { %v1455_v50 = vsel %vm918_vm2, %v4796_v55, 0.0  ;;  %3668 = vmatprep.subr.bf16.mxu1 %v4252_v40 }
 0x718   : > { %1456 = vadd.xlane.f32.xlu0 %v1455_v50 }
 0x71b   : > { %v4803_v56 = vpop.eup %3981 }
 0x71c   : > { %v1467_v24 = vsel %vm918_vm2, %v4803_v56, 0.0 }
 0x71d   : > { %1468 = vadd.xlane.f32.xlu0 %v1467_v24  ;;  %3665 = vmatmul.mubr.msk.bf16.vlgmr.msra.gmra.mrb[56].mxu1 %vm729_vm1, %v1980_v57 }
 0x71e   : > { %3669 = vmatpush3.bf16.xpose.msra.mxu1 %v2038_v17  ;;  %3670 = vmatprep.mubr.msk.bf16.mxu1 %vm4253_vm0, %v4252_v40 }
 0x71f   : > { %3680 = vmatprep.subr.bf16.mxu1 %v4252_v40 }
 0x725   : > { %3671 = vmatmul.mubr.msk.bf16.vlgmr.msra.gmra.mrb[60].mxu1 %vm729_vm1, %v2031_v63 }
 0x726   : > { %3682 = vmatprep.mubr.msk.bf16.mxu1 %vm4253_vm0, %v4252_v40 }
 0x733   : > { %1500 = vrot.lane.b32.xlu0 %v4570_v42, %s4254_s12 }
 0x73a   : > { %v1412_v61 = vpop.xlane.xlu1 %1411 }
 0x73b   : > { %v1432_v62 = vsub.f32 %v4758_v47, %v1412_v61 }
 0x73d   : > { %v1441_v25 = vmul.f32 1.442695, %v1432_v62 }
 0x73f   : > { %3983 = vpow2.f32 %v1441_v25 }
 0x740   : > { %3985 = vpow2.f32 %v1449_v34 }
 0x749   : > { %v3984_v3 = vpop.eup %3983 }
 0x74a   : > { %v1458_v5 = vsel %vm918_vm2, %v3984_v3, 0.0  ;;  %v3986_v6 = vpop.eup %3985 }
 0x74b   : > { %1459 = vadd.xlane.f32.xlu1 %v1458_v5  ;;  %v1470_v10 = vsel %vm918_vm2, %v3986_v6, 0.0 }
 0x74f   : > { %1471 = vadd.xlane.f32.xlu1 %v1470_v10 }
 0x760   : > { %1596 = vrot.lane.b32.xlu1 %v4591_v60, %s4254_s12 }
 0x7a3   : > { %v4823_v15 = vpop.f32.mrb[40].mxu1 }
 0x7a4   : > { %v3612_v54 = vpop.f32.mrb[41].mxu1 }
 0x7a5   : > { %v1457_v4 = vpop.xlane.xlu0 %1456  ;;  %v4825_v47 = vpop.f32.mrb[42].mxu1 }
 0x7a6   : > { %v1692_v33 = vpack.c.bf16 %v4825_v47, %v4823_v15  ;;  %v3613_v19 = vpop.f32.mrb[43].mxu1  ;;  %3987 = vrcp.f32 %v1457_v4 }
 0x7aa   : > { %v1469_v20 = vpop.xlane.xlu0 %1468 }
 0x7ae   : > { %v1501_v27 = vpop.permute.xlu0 %1500 }
 0x7af   : > { %3603 = vmatpush3.bf16.msra.mxu0 %v1501_v27 }
 0x7b0   : > { %3614 = vmatprep.subr.bf16.mxu0 %v4252_v40  ;;  %v3988_v49 = vpop.eup %3987 }
 0x7b1   : > { %v1487_v17 = vmul.f32 %v3988_v49, %v4796_v55 }
 0x7d8   : > { %v1460_v31 = vpop.xlane.xlu1 %1459  ;;  %v4830_v35 = vpop.f32.mrb[44].mxu1 }
 0x7d9   : > { %3989 = vrcp.f32 %v1460_v31  ;;  %v3624_v38 = vpop.f32.mrb[45].mxu1 }
 0x7da   : > { %v4832_v44 = vpop.f32.mrb[46].mxu1 }
 0x7db   : > { %v1694_v46 = vpack.c.bf16 %v4832_v44, %v4830_v35  ;;  %v3625_v16 = vpop.f32.mrb[47].mxu1  ;;  %v3911_v35 = vld [vmem:[#allocation7 + $0x20] sm:$0xff]  }
 0x7dc   : > { %v1472_v8 = vpop.xlane.xlu1 %1471 }
 0x7dd   : > { %3991 = vrcp.f32 %v1472_v8 }
 0x7de   : > { %3993 = vrcp.f32 %v1469_v20 }
 0x7e0   : > { %v1921_v21 = vpop.f32.mrb[48].mxu1  ;;  %v1597_v61 = vpop.permute.xlu1 %1596 }
 0x7e1   : > { %v3654_v52 = vpop.f32.mrb[49].mxu1  ;;  %v2081_v53 = vsel %vm918_vm2, %v1921_v21, -inf }
 0x7e2   : > { %2082 = vmax.xlane.f32.xlu1 %v2081_v53  ;;  %v1924_v45 = vpop.f32.mrb[50].mxu1 }
 0x7e3   : > { %v3990_v50 = vpop.eup %3989  ;;  %v3655_v57 = vpop.f32.mrb[51].mxu1  ;;  %v2084_v24 = vsel %vm918_vm2, %v1924_v45, -inf }
 0x7e4   : > { %v1488_v63 = vmul.f32 %v3990_v50, %v3984_v3  ;;  %2085 = vmax.xlane.f32.xlu0 %v2084_v24  ;;  %v3907_v57 = vld [vmem:[#allocation7 + $0x10] sm:$0xff]   ;;  %v3908_v24 = vld [vmem:[#allocation7 + $0x18] sm:$0xff]  }
 0x7e6   : > { %v1495_v59 = vpack.c.bf16 %v1488_v63, %v1487_v17  ;;  %v4853_v17 = vld [vmem:[#allocation7] sm:$0xff]  }
 0x7e7   : > { %v3992_v30 = vpop.eup %3991 }
 0x7e8   : > { %3605 = vmatmul.mubr.msk.bf16.vlgmr.msra.gmra.mrb[32].mxu0 %vm918_vm2, %v1495_v59  ;;  %v1972_v62 = vpop.f32.mrb[52].mxu1  ;;  %v3994_v34 = vpop.eup %3993  ;;  %v1492_v10 = vmul.f32 %v3992_v30, %v3986_v6 }
 0x7e9   : > { %3615 = vmatpush3.bf16.msra.mxu0 %v1597_v61  ;;  %v3660_v25 = vpop.f32.mrb[53].mxu1  ;;  %v2087_v5 = vsel %vm918_vm2, %v1972_v62, -inf  ;;  %3616 = vmatprep.mubr.msk.bf16.mxu0 %vm4253_vm0, %v4252_v40  ;;  %v1491_v4 = vmul.f32 %v3994_v34, %v4803_v56 }
 0x7ea   : > { %2088 = vmax.xlane.f32.xlu0 %v2087_v5  ;;  %v1975_v54 = vpop.f32.mrb[54].mxu1  ;;  %3626 = vmatprep.subr.bf16.mxu0 %v3907_v57 }
 0x7eb   : > { %v3661_v55 = vpop.f32.mrb[55].mxu1  ;;  %v2090_v3 = vsel %vm918_vm2, %v1975_v54, -inf  ;;  %v1497_v19 = vpack.c.bf16 %v1492_v10, %v1491_v4 }
 0x7ec   : > { %2091 = vmax.xlane.f32.xlu1 %v2090_v3 }
 0x7f0   : > { %3617 = vmatmul.mubr.msk.bf16.vlgmr.msra.gmra.mrb[36].mxu0 %vm918_vm2, %v1497_v19  ;;  %v2023_v20 = vpop.f32.mrb[56].mxu1 }
 0x7f1   : > { %v3666_v27 = vpop.f32.mrb[57].mxu1  ;;  %v2093_v31 = vsel %vm918_vm2, %v2023_v20, -inf  ;;  %3627 = vmatpush3.bf16.msra.mxu0 %v3907_v57 }
 0x7f2   : > { %2094 = vmax.xlane.f32.xlu0 %v2093_v31  ;;  %v2026_v38 = vpop.f32.mrb[58].mxu1  ;;  %3628 = vmatprep.subr.bf16.mxu0 %v3908_v24 }
 0x7f3   : > { %v3667_v16 = vpop.f32.mrb[59].mxu1  ;;  %v2096_v6 = vsel %vm918_vm2, %v2026_v38, -inf }
 0x7f4   : > { %2097 = vmax.xlane.f32.xlu1 %v2096_v6 }
 0x7f5   : > { %3629 = vmatpush3.bf16.msra.mxu0 %v3908_v24 }
 0x7f6   : > { %3638 = vmatprep.subr.bf16.mxu0 %v4853_v17 }
 0x7f8   : > { %v2074_v8 = vpop.f32.mrb[60].mxu1 }
 0x7f9   : > { %v3672_v49 = vpop.f32.mrb[61].mxu1  ;;  %v2099_v52 = vsel %vm918_vm2, %v2074_v8, -inf }
 0x7fa   : > { %2100 = vmax.xlane.f32.xlu0 %v2099_v52  ;;  %v4849_v56 = vpop.f32.mrb[62].mxu1 }
 0x7fb   : > { %v3673_v53 = vpop.f32.mrb[63].mxu1  ;;  %v2102_v50 = vsel %vm918_vm2, %v4849_v56, -inf }
 0x7fc   : > { %2103 = vmax.xlane.f32.xlu1 %v2102_v50 }
 0x86f   : > { %v2083_v63 = vpop.xlane.xlu1 %2082 }
 0x870   : > { %v2105_v59 = vsub.f32 %v1921_v21, %v2083_v63 }
 0x871   : > { %v2086_v30 = vpop.xlane.xlu0 %2085 }
 0x872   : > { %v2113_v61 = vmul.f32 1.442695, %v2105_v59  ;;  %v2106_v34 = vsub.f32 %v1924_v45, %v2086_v30 }
 0x874   : > { %3995 = vpow2.f32 %v2113_v61  ;;  %v2115_v25 = vmul.f32 1.442695, %v2106_v34 }
 0x876   : > { %3997 = vpow2.f32 %v2115_v25 }
 0x877   : > { %v2089_v5 = vpop.xlane.xlu0 %2088 }
 0x878   : > { %v2107_v10 = vsub.f32 %v1972_v62, %v2089_v5 }
 0x879   : > { %v2092_v55 = vpop.xlane.xlu1 %2091 }
 0x87a   : > { %v2117_v3 = vmul.f32 1.442695, %v2107_v10  ;;  %v2108_v4 = vsub.f32 %v1975_v54, %v2092_v55 }
 0x87c   : > { %3999 = vpow2.f32 %v2117_v3  ;;  %v2119_v19 = vmul.f32 1.442695, %v2108_v4 }
 0x87e   : > { %v4856_v27 = vpop.eup %3995  ;;  %4001 = vpow2.f32 %v2119_v19 }
 0x87f   : > { %v2095_v31 = vpop.xlane.xlu0 %2094  ;;  %v2129_v21 = vsel %vm918_vm2, %v4856_v27, 0.0 }
 0x880   : > { %v4860_v16 = vpop.eup %3997  ;;  %v2109_v45 = vsub.f32 %v2023_v20, %v2095_v31  ;;  %2130 = vadd.xlane.f32.xlu0 %v2129_v21 }
 0x881   : > { %v2098_v6 = vpop.xlane.xlu1 %2097  ;;  %v2132_v62 = vsel %vm918_vm2, %v4860_v16, 0.0 }
 0x882   : > { %v2121_v49 = vmul.f32 1.442695, %v2109_v45  ;;  %v2110_v52 = vsub.f32 %v2026_v38, %v2098_v6  ;;  %2133 = vadd.xlane.f32.xlu1 %v2132_v62  ;;  %v3910_v45 = vld [vmem:[#allocation7 + $0x8] sm:$0xff]  }
 0x884   : > { %4003 = vpow2.f32 %v2121_v49  ;;  %v2123_v54 = vmul.f32 1.442695, %v2110_v52 }
 0x886   : > { %v4864_v53 = vpop.eup %3999  ;;  %4005 = vpow2.f32 %v2123_v54 }
 0x887   : > { %v2101_v50 = vpop.xlane.xlu0 %2100  ;;  %v2135_v57 = vsel %vm918_vm2, %v4864_v53, 0.0 }
 0x888   : > { %v4868_v24 = vpop.eup %4001  ;;  %v2111_v20 = vsub.f32 %v2074_v8, %v2101_v50  ;;  %2136 = vadd.xlane.f32.xlu0 %v2135_v57 }
 0x889   : > { %v2138_v63 = vsel %vm918_vm2, %v4868_v24, 0.0  ;;  %v2104_v5 = vpop.xlane.xlu1 %2103 }
 0x88a   : > { %v2125_v59 = vmul.f32 1.442695, %v2111_v20  ;;  %2139 = vadd.xlane.f32.xlu1 %v2138_v63  ;;  %v2112_v10 = vsub.f32 %v4849_v56, %v2104_v5 }
 0x88c   : > { %4007 = vpow2.f32 %v2125_v59  ;;  %v2127_v55 = vmul.f32 1.442695, %v2112_v10  ;;  %v3912_v10 = vld [vmem:[#allocation7 + $0x28] sm:$0xff]  }
 0x88e   : > { %v4872_v38 = vpop.eup %4003  ;;  %4009 = vpow2.f32 %v2127_v55 }
 0x88f   : > { %v2141_v30 = vsel %vm918_vm2, %v4872_v38, 0.0 }
 0x890   : > { %v4876_v61 = vpop.eup %4005  ;;  %2142 = vadd.xlane.f32.xlu0 %v2141_v30 }
 0x891   : > { %v2144_v34 = vsel %vm918_vm2, %v4876_v61, 0.0 }
 0x892   : > { %2145 = vadd.xlane.f32.xlu1 %v2144_v34 }
 0x896   : > { %v4880_v8 = vpop.eup %4007 }
 0x897   : > { %v2147_v25 = vsel %vm918_vm2, %v4880_v8, 0.0 }
 0x898   : > { %2148 = vadd.xlane.f32.xlu0 %v2147_v25  ;;  %v4905_v62 = vpop.eup %4009 }
 0x8a3   : > { %2220 = vrot.lane.b32.xlu1 %v4567_v37, %s4255_s13 }
 0x8a7   : > { %2267 = vrot.lane.b32.xlu1 %v4591_v60, %s4255_s13 }
 0x8ae   : > { %2173 = vrot.lane.b32.xlu0 %v4570_v42, %s4255_s13 }
 0x8b2   : > { %2468 = vrot.lane.b32.xlu0 %v4563_v26, %s4256_s29 }
 0x8b6   : > { %2519 = vrot.lane.b32.xlu0 %v4580_v51, %s4256_s29 }
 0x8ba   : > { %2517 = vrot.lane.b32.xlu0 %v4577_v48, %s4256_s29 }
 0x8bb   : > { %v1540_v3 = vpop.f32.mrb[32].mxu0 }
 0x8bc   : > { %v3606_v4 = vpop.f32.mrb[33].mxu0 }
 0x8bd   : > { %v1543_v19 = vpop.f32.mrb[34].mxu0 }
 0x8be   : > { %v1691_v31 = vpack.c.bf16 %v1543_v19, %v1540_v3  ;;  %v3607_v21 = vpop.f32.mrb[35].mxu0  ;;  %2568 = vrot.lane.b32.xlu0 %v4597_v1, %s4256_s29  ;;  %v2150_v1 = vsel %vm918_vm2, %v4905_v62, 0.0 }
 0x8c0   : > { %3630 = vmatprep.mubr.msk.bf16.mxu0 %vm729_vm1, %v1691_v31 }
 0x8c1   : > { %3631 = vmatmul.mubr.msk.bf16.vlgmr.msra.gmra.mrb[40].mxu0 %vm729_vm1, %v1692_v33 }
 0x8c2   : > { %3639 = vmatpush3.bf16.msra.mxu0 %v4853_v17 }
 0x8c3   : > { %v1636_v26 = vpop.f32.mrb[36].mxu0  ;;  %3640 = vmatprep.subr.bf16.mxu0 %v3910_v45 }
 0x8c4   : > { %v3618_v48 = vpop.f32.mrb[37].mxu0 }
 0x8c5   : > { %v1639_v51 = vpop.f32.mrb[38].mxu0 }
 0x8c6   : > { %v1693_v56 = vpack.c.bf16 %v1639_v51, %v1636_v26  ;;  %v3619_v6 = vpop.f32.mrb[39].mxu0  ;;  %3641 = vmatpush3.bf16.msra.mxu0 %v3910_v45 }
 0x8c7   : > { %3674 = vmatprep.subr.bf16.mxu0 %v4252_v40 }
 0x8c8   : > { %3634 = vmatprep.mubr.msk.bf16.mxu0 %vm729_vm1, %v1693_v56 }
 0x8c9   : > { %3635 = vmatmul.mubr.msk.bf16.gmra.mrb[44].mxu0 %vm729_vm1, %v1694_v46 }
 0x8ca   : > { %3642 = vmatprep.mubr.msk.bf16.mxu0 %vm729_vm1, %v1187_v29 }
 0x8cb   : > { %2151 = vadd.xlane.f32.xlu1 %v2150_v1 }
 0x8d1   : > { %3643 = vmatmul.mubr.msk.bf16.vlgmr.msra.gmra.mrb[40].mxu0 %vm729_vm1, %v1188_v0 }
 0x8d2   : > { %3646 = vmatprep.mubr.msk.bf16.mxu0 %vm729_vm1, %v1189_v43 }
 0x8d9   : > { %3647 = vmatmul.mubr.msk.bf16.gmra.mrb[44].mxu0 %vm729_vm1, %v1190_v9 }
 0x8da   : > { %3676 = vmatprep.mubr.msk.bf16.mxu0 %vm4253_vm0, %v4252_v40 }
 0x8dc   : > { %2314 = vrot.lane.b32.xlu1 %v4586_v58, %s4255_s13 }
 0x8e0   : > { %2466 = vrot.lane.b32.xlu1 %v4561_v22, %s4256_s29 }
 0x8e4   : > { %2570 = vrot.lane.b32.xlu1 %v4599_v2, %s4256_s29 }
 0x8e8   : > { %2621 = vrot.lane.b32.xlu1 %v4614_v14, %s4256_s29 }
 0x8ec   : > { %2619 = vrot.lane.b32.xlu1 %v4612_v12, %s4256_s29 }
 0x90d   : > { %v2131_v18 = vpop.xlane.xlu0 %2130 }
 0x90f   : > { %v2134_v32 = vpop.xlane.xlu1 %2133 }
 0x915   : > { %v2137_v0 = vpop.xlane.xlu0 %2136 }
 0x916   : > { %4011 = vrcp.f32 %v2137_v0 }
 0x917   : > { %v2140_v41 = vpop.xlane.xlu1 %2139 }
 0x918   : > { %4013 = vrcp.f32 %v2140_v41 }
 0x919   : > { %4015 = vrcp.f32 %v2134_v32 }
 0x91a   : > { %4017 = vrcp.f32 %v2131_v18 }
 0x91d   : > { %v2143_v22 = vpop.xlane.xlu0 %2142 }
 0x91f   : > { %v2146_v11 = vpop.xlane.xlu1 %2145 }
 0x920   : > { %v4012_v9 = vpop.eup %4011  ;;  %4019 = vrcp.f32 %v2146_v11 }
 0x921   : > { %v2163_v2 = vmul.f32 %v4012_v9, %v4864_v53  ;;  %4021 = vrcp.f32 %v2143_v22 }
 0x922   : > { %v4014_v23 = vpop.eup %4013 }
 0x923   : > { %v2164_v14 = vmul.f32 %v4014_v23, %v4868_v24  ;;  %v2221_v28 = vpop.permute.xlu1 %2220  ;;  %v4016_v29 = vpop.eup %4015 }
 0x924   : > { %3681 = vmatpush3.bf16.msra.mxu1 %v2221_v28  ;;  %v4018_v39 = vpop.eup %4017  ;;  %v2162_v43 = vmul.f32 %v4016_v29, %v4860_v16 }
 0x925   : > { %v2149_v12 = vpop.xlane.xlu0 %2148  ;;  %v2170_v36 = vpack.c.bf16 %v2164_v14, %v2163_v2  ;;  %3692 = vmatprep.subr.bf16.mxu1 %v4252_v40  ;;  %v2161_v15 = vmul.f32 %v4018_v39, %v4856_v27 }
 0x926   : > { %4023 = vrcp.f32 %v2149_v12 }
 0x927   : > { %3683 = vmatmul.mubr.msk.bf16.vlgmr.msra.gmra.mrb[64].mxu1 %vm918_vm2, %v2170_v36  ;;  %v2169_v33 = vpack.c.bf16 %v2162_v43, %v2161_v15  ;;  %v2268_v46 = vpop.permute.xlu1 %2267 }
 0x928   : > { %3694 = vmatprep.mubr.msk.bf16.mxu1 %vm4253_vm0, %v4252_v40 }
 0x929   : > { %v2174_v47 = vpop.permute.xlu0 %2173 }
 0x92a   : > { %3675 = vmatpush3.bf16.msra.mxu0 %v2174_v47  ;;  %v4020_v44 = vpop.eup %4019 }
 0x92b   : > { %3686 = vmatprep.subr.bf16.mxu0 %v4252_v40  ;;  %v4022_v17 = vpop.eup %4021  ;;  %v2166_v16 = vmul.f32 %v4020_v44, %v4876_v61 }
 0x92c   : > { %v2165_v27 = vmul.f32 %v4022_v17, %v4872_v38 }
 0x92d   : > { %3677 = vmatmul.mubr.msk.bf16.vlgmr.msra.gmra.mrb[48].mxu0 %vm918_vm2, %v2169_v33  ;;  %v2469_v20 = vpop.permute.xlu0 %2468 }
 0x92e   : > { %3687 = vmatpush3.bf16.msra.mxu0 %v2268_v46  ;;  %3688 = vmatprep.mubr.msk.bf16.mxu0 %vm4253_vm0, %v4252_v40  ;;  %v2171_v49 = vpack.c.bf16 %v2166_v16, %v2165_v27  ;;  %v2474_v59 = vsel %vm729_vm1, %v2469_v20, 0 }
 0x92f   : > { %3698 = vmatprep.subr.bf16.mxu0 %v3911_v35 }
 0x930   : > { %v4024_v53 = vpop.eup %4023 }
 0x931   : > { %v2167_v57 = vmul.f32 %v4024_v53, %v4880_v8  ;;  %v2520_v30 = vpop.permute.xlu0 %2519 }
 0x932   : > { %v2525_v34 = vsel %vm729_vm1, %v2520_v30, 0 }
 0x935   : > { %3689 = vmatmul.mubr.msk.bf16.vlgmr.msra.gmra.mrb[52].mxu0 %vm918_vm2, %v2171_v49  ;;  %v2518_v25 = vpop.permute.xlu0 %2517 }
 0x936   : > { %3699 = vmatpush3.bf16.msra.mxu0 %v3911_v35 }
 0x937   : > { %3700 = vmatprep.subr.bf16.mxu0 %v3912_v10 }
 0x939   : > { %v2569_v39 = vpop.permute.xlu0 %2568 }
 0x93a   : > { %3701 = vmatpush3.bf16.msra.mxu0 %v3912_v10 }
 0x93b   : > { %3722 = vmatprep.subr.bf16.mxu0 %v4252_v40 }
 0x958   : > { %v2152_v52 = vpop.xlane.xlu1 %2151 }
 0x959   : > { %4025 = vrcp.f32 %v2152_v52 }
 0x95c   : > { %v2315_v54 = vpop.permute.xlu1 %2314 }
 0x95d   : > { %3693 = vmatpush3.bf16.msra.mxu1 %v2315_v54 }
 0x95e   : > { %3710 = vmatprep.subr.bf16.mxu1 %v4252_v40 }
 0x960   : > { %v2467_v38 = vpop.permute.xlu1 %2466 }
 0x963   : > { %v4026_v50 = vpop.eup %4025 }
 0x964   : > { %v2168_v24 = vmul.f32 %v4026_v50, %v4905_v62  ;;  %v2571_v61 = vpop.permute.xlu1 %2570 }
 0x965   : > { %v2576_v6 = vsel %vm729_vm1, %v2571_v61, 0 }
 0x966   : > { %v2172_v63 = vpack.c.bf16 %v2168_v24, %v2167_v57 }
 0x968   : > { %3695 = vmatmul.mubr.msk.bf16.vlgmr.msra.gmra.mrb[68].mxu1 %vm918_vm2, %v2172_v63  ;;  %v2622_v8 = vpop.permute.xlu1 %2621 }
 0x969   : > { %3711 = vmatpush3.bf16.xpose.msra.mxu1 %v2474_v59  ;;  %3712 = vmatprep.mubr.msk.bf16.mxu1 %vm4253_vm0, %v4252_v40  ;;  %v2627_v5 = vsel %vm729_vm1, %v2622_v8, 0 }
 0x96a   : > { %3716 = vmatprep.subr.bf16.mxu1 %v4252_v40 }
 0x96c   : > { %v2620_v55 = vpop.permute.xlu1 %2619 }
 0x970   : > { %3713 = vmatmul.mubr.msk.bf16.vlgmr.msra.gmra.mrb[72].mxu1 %vm729_vm1, %v2467_v38 }
 0x971   : > { %3717 = vmatpush3.bf16.xpose.msra.mxu1 %v2525_v34  ;;  %3718 = vmatprep.mubr.msk.bf16.mxu1 %vm4253_vm0, %v4252_v40 }
 0x972   : > { %3728 = vmatprep.subr.bf16.mxu1 %v4252_v40 }
 0x978   : > { %3719 = vmatmul.mubr.msk.bf16.vlgmr.msra.gmra.mrb[76].mxu1 %vm729_vm1, %v2518_v25 }
 0x979   : > { %3729 = vmatpush3.bf16.xpose.msra.mxu1 %v2627_v5  ;;  %3730 = vmatprep.mubr.msk.bf16.mxu1 %vm4253_vm0, %v4252_v40 }
 0x97a   : > { %3740 = vmatprep.subr.bf16.mxu1 %v4252_v40 }
 0x980   : > { %3731 = vmatmul.mubr.msk.bf16.vlgmr.msra.gmra.mrb[80].mxu1 %vm729_vm1, %v2620_v55 }
 0x981   : > { %3742 = vmatprep.mubr.msk.bf16.mxu1 %vm4253_vm0, %v4252_v40 }
 0x9fa   : > { %v2260_v3 = vpop.f32.mrb[64].mxu1 }
 0x9fb   : > { %v3684_v4 = vpop.f32.mrb[65].mxu1 }
 0x9fc   : > { %v2263_v19 = vpop.f32.mrb[66].mxu1 }
 0x9fd   : > { %v2362_v31 = vpack.c.bf16 %v2263_v19, %v2260_v3  ;;  %v3685_v21 = vpop.f32.mrb[67].mxu1 }
 0xa00   : > { %v2213_v45 = vpop.f32.mrb[48].mxu0 }
 0xa01   : > { %v3678_v26 = vpop.f32.mrb[49].mxu0 }
 0xa02   : > { %v2216_v48 = vpop.f32.mrb[50].mxu0 }
 0xa03   : > { %v2361_v51 = vpack.c.bf16 %v2216_v48, %v2213_v45  ;;  %v3679_v56 = vpop.f32.mrb[51].mxu0 }
 0xa05   : > { %3702 = vmatprep.mubr.msk.bf16.mxu0 %vm729_vm1, %v2361_v51 }
 0xa06   : > { %3703 = vmatmul.mubr.msk.bf16.vlgmr.msra.gmra.mrb[40].mxu0 %vm729_vm1, %v2362_v31 }
 0xa07   : > { %3723 = vmatpush3.bf16.xpose.msra.mxu0 %v2576_v6 }
 0xa08   : > { %v2307_v62 = vpop.f32.mrb[52].mxu0  ;;  %3734 = vmatprep.subr.bf16.mxu0 %v4252_v40 }
 0xa09   : > { %v3690_v1 = vpop.f32.mrb[53].mxu0 }
 0xa0a   : > { %v2310_v18 = vpop.f32.mrb[54].mxu0 }
 0xa0b   : > { %v2363_v32 = vpack.c.bf16 %v2310_v18, %v2307_v62  ;;  %v3691_v0 = vpop.f32.mrb[55].mxu0 }
 0xa0d   : > { %3706 = vmatprep.mubr.msk.bf16.mxu0 %vm729_vm1, %v2363_v32 }
 0xa3b   : > { %v2354_v41 = vpop.f32.mrb[68].mxu1 }
 0xa3c   : > { %v3696_v11 = vpop.f32.mrb[69].mxu1 }
 0xa3d   : > { %v2357_v9 = vpop.f32.mrb[70].mxu1 }
 0xa3e   : > { %v2364_v22 = vpack.c.bf16 %v2357_v9, %v2354_v41  ;;  %v3697_v23 = vpop.f32.mrb[71].mxu1 }
 0xa40   : > { %3707 = vmatmul.mubr.msk.bf16.gmra.mrb[44].mxu0 %vm729_vm1, %v2364_v22 }
 0xa41   : > { %3724 = vmatprep.mubr.msk.bf16.mxu0 %vm4253_vm0, %v4252_v40 }
 0xa43   : > { %v2510_v2 = vpop.f32.mrb[72].mxu1 }
 0xa44   : > { %v3714_v14 = vpop.f32.mrb[73].mxu1  ;;  %v2670_v28 = vsel %vm918_vm2, %v2510_v2, -inf }
 0xa45   : > { %2671 = vmax.xlane.f32.xlu0 %v2670_v28  ;;  %v2513_v29 = vpop.f32.mrb[74].mxu1 }
 0xa46   : > { %v3715_v12 = vpop.f32.mrb[75].mxu1  ;;  %v2673_v36 = vsel %vm918_vm2, %v2513_v29, -inf }
 0xa47   : > { %2674 = vmax.xlane.f32.xlu1 %v2673_v36 }
 0xa48   : > { %3725 = vmatmul.mubr.msk.bf16.vlgmr.msra.gmra.mrb[56].mxu0 %vm729_vm1, %v2569_v39 }
 0xa49   : > { %3736 = vmatprep.mubr.msk.bf16.mxu0 %vm4253_vm0, %v4252_v40 }
 0xa4b   : > { %v2561_v43 = vpop.f32.mrb[76].mxu1 }
 0xa4c   : > { %v3720_v15 = vpop.f32.mrb[77].mxu1  ;;  %v2676_v47 = vsel %vm918_vm2, %v2561_v43, -inf }
 0xa4d   : > { %2677 = vmax.xlane.f32.xlu0 %v2676_v47  ;;  %v2564_v33 = vpop.f32.mrb[78].mxu1 }
 0xa4e   : > { %v3721_v35 = vpop.f32.mrb[79].mxu1  ;;  %v2679_v44 = vsel %vm918_vm2, %v2564_v33, -inf }
 0xa51   : > { %2680 = vmax.xlane.f32.xlu0 %v2679_v44 }
 0xa53   : > { %v2663_v46 = vpop.f32.mrb[80].mxu1 }
 0xa54   : > { %v3732_v17 = vpop.f32.mrb[81].mxu1  ;;  %v2688_v55 = vsel %vm918_vm2, %v2663_v46, -inf }
 0xa55   : > { %v2666_v16 = vpop.f32.mrb[82].mxu1 }
 0xa56   : > { %v3733_v27 = vpop.f32.mrb[83].mxu1  ;;  %v2691_v4 = vsel %vm918_vm2, %v2666_v16, -inf }
 0xad2   : > { %v2672_v49 = vpop.xlane.xlu0 %2671 }
 0xad3   : > { %v2694_v53 = vsub.f32 %v2510_v2, %v2672_v49 }
 0xad4   : > { %v2675_v54 = vpop.xlane.xlu1 %2674 }
 0xad5   : > { %v2695_v50 = vsub.f32 %v2513_v29, %v2675_v54  ;;  %v2702_v24 = vmul.f32 1.442695, %v2694_v53 }
 0xad7   : > { %v2704_v63 = vmul.f32 1.442695, %v2695_v50  ;;  %4027 = vpow2.f32 %v2702_v24 }
 0xad9   : > { %4029 = vpow2.f32 %v2704_v63 }
 0xada   : > { %v2678_v52 = vpop.xlane.xlu0 %2677 }
 0xadb   : > { %v2696_v20 = vsub.f32 %v2561_v43, %v2678_v52 }
 0xadd   : > { %v2706_v38 = vmul.f32 1.442695, %v2696_v20 }
 0xade   : > { %v2681_v57 = vpop.xlane.xlu0 %2680 }
 0xadf   : > { %v2697_v59 = vsub.f32 %v2564_v33, %v2681_v57  ;;  %4031 = vpow2.f32 %v2706_v38 }
 0xae1   : > { %v2708_v30 = vmul.f32 1.442695, %v2697_v59  ;;  %v4998_v3 = vpop.eup %4027 }
 0xae2   : > { %v2718_v31 = vsel %vm918_vm2, %v4998_v3, 0.0 }
 0xae3   : > { %4033 = vpow2.f32 %v2708_v30  ;;  %v4030_v19 = vpop.eup %4029 }
 0xae4   : > { %v2721_v45 = vsel %vm918_vm2, %v4030_v19, 0.0 }
 0xae9   : > { %v4032_v21 = vpop.eup %4031 }
 0xaea   : > { %v2724_v48 = vsel %vm918_vm2, %v4032_v21, 0.0 }
 0xaed   : > { %v4034_v26 = vpop.eup %4033 }
 0xaee   : > { %v2727_v51 = vsel %vm918_vm2, %v4034_v26, 0.0 }
 0xb1b   : > { %v2612_v61 = vpop.f32.mrb[56].mxu0 }
 0xb1c   : > { %v3726_v34 = vpop.f32.mrb[57].mxu0  ;;  %v2682_v8 = vsel %vm918_vm2, %v2612_v61, -inf }
 0xb1d   : > { %v2615_v25 = vpop.f32.mrb[58].mxu0  ;;  %2683 = vmax.xlane.f32.xlu0 %v2682_v8 }
 0xb1e   : > { %v3727_v5 = vpop.f32.mrb[59].mxu0  ;;  %v2685_v10 = vsel %vm918_vm2, %v2615_v25, -inf }
 0xb1f   : > { %2686 = vmax.xlane.f32.xlu1 %v2685_v10 }
 0xb21   : > { %2689 = vmax.xlane.f32.xlu0 %v2688_v55  ;;  %v3913_v55 = vld [vmem:[#allocation7 + $0x30] sm:$0xff]  }
 0xb23   : > { %2692 = vmax.xlane.f32.xlu1 %v2691_v4 }
 0xb25   : > { %2719 = vadd.xlane.f32.xlu0 %v2718_v31 }
 0xb27   : > { %2722 = vadd.xlane.f32.xlu1 %v2721_v45 }
 0xb29   : > { %2725 = vadd.xlane.f32.xlu0 %v2724_v48 }
 0xb2b   : > { %2728 = vadd.xlane.f32.xlu1 %v2727_v51 }
 0xbaa   : > { %v2684_v56 = vpop.xlane.xlu0 %2683 }
 0xbab   : > { %v2698_v6 = vsub.f32 %v2612_v61, %v2684_v56 }
 0xbac   : > { %v2687_v62 = vpop.xlane.xlu1 %2686 }
 0xbad   : > { %v2710_v32 = vmul.f32 1.442695, %v2698_v6  ;;  %v2699_v12 = vsub.f32 %v2615_v25, %v2687_v62 }
 0xbae   : > { %v2690_v1 = vpop.xlane.xlu0 %2689 }
 0xbaf   : > { %v2700_v18 = vsub.f32 %v2663_v46, %v2690_v1  ;;  %v2712_v36 = vmul.f32 1.442695, %v2699_v12 }
 0xbb0   : > { %v2693_v0 = vpop.xlane.xlu1 %2692 }
 0xbb1   : > { %v2714_v41 = vmul.f32 1.442695, %v2700_v18  ;;  %v2701_v11 = vsub.f32 %v2666_v16, %v2693_v0 }
 0xbb2   : > { %v2720_v47 = vpop.xlane.xlu0 %2719 }
 0xbb3   : > { %4035 = vpow2.f32 %v2714_v41  ;;  %v2716_v9 = vmul.f32 1.442695, %v2701_v11 }
 0xbb4   : > { %4037 = vpow2.f32 %v2710_v32  ;;  %v2723_v15 = vpop.xlane.xlu1 %2722 }
 0xbb5   : > { %4039 = vpow2.f32 %v2716_v9 }
 0xbb6   : > { %4041 = vpow2.f32 %v2712_v36 }
 0xbb8   : > { %v2729_v33 = vpop.xlane.xlu1 %2728 }
 0xbb9   : > { %4043 = vrcp.f32 %v2729_v33 }
 0xbba   : > { %4045 = vrcp.f32 %v2723_v15 }
 0xbbd   : > { %v4036_v22 = vpop.eup %4035 }
 0xbbe   : > { %v5006_v23 = vpop.eup %4037  ;;  %v2736_v2 = vsel %vm918_vm2, %v4036_v22, 0.0 }
 0xbbf   : > { %v4040_v14 = vpop.eup %4039  ;;  %2737 = vadd.xlane.f32.xlu0 %v2736_v2  ;;  %v2730_v29 = vsel %vm918_vm2, %v5006_v23, 0.0  ;;  %v3057_v2 = vsub.s32 4, %v4519_v13 }
 0xbc0   : > { %v2739_v28 = vsel %vm918_vm2, %v4040_v14, 0.0  ;;  %v4042_v39 = vpop.eup %4041 }
 0xbc1   : > { %2740 = vadd.xlane.f32.xlu1 %v2739_v28  ;;  %v2733_v43 = vsel %vm918_vm2, %v4042_v39, 0.0 }
 0xbc3   : > { %2731 = vadd.xlane.f32.xlu0 %v2730_v29 }
 0xbd2   : > { %2809 = vrot.lane.b32.xlu1 %v4567_v37, %s4256_s29  ;;  %v2726_v37 = vpop.xlane.xlu0 %2725 }
 0xbd3   : > { %4047 = vrcp.f32 %v2726_v37 }
 0xbd4   : > { %4049 = vrcp.f32 %v2720_v47 }
 0xbd6   : > { %2856 = vrot.lane.b32.xlu1 %v4591_v60, %s4256_s29 }
 0xbd9   : > { %2762 = vrot.lane.b32.xlu0 %v4570_v42, %s4256_s29  ;;  %v4044_v42 = vpop.eup %4043 }
 0xbda   : > { %v4046_v35 = vpop.eup %4045  ;;  %v2753_v17 = vmul.f32 %v4044_v42, %v4034_v26 }
 0xbdb   : > { %v2751_v49 = vmul.f32 %v4046_v35, %v4030_v19  ;;  %v4078_v35 = vld [vmem:[%s4468_s6] sm:$0xff] }
 0xbdd   : > { %v4048_v46 = vpop.eup %4047 }
 0xbde   : > { %v4050_v27 = vpop.eup %4049  ;;  %v2752_v52 = vmul.f32 %v4048_v46, %v4032_v21 }
 0xbe0   : > { %v2759_v50 = vpack.c.bf16 %v2753_v17, %v2752_v52  ;;  %v4079_v17 = vld [vmem:[%s4468_s6 + $0x18] sm:$0xff] }
 0xbfa   : > { %2734 = vadd.xlane.f32.xlu1 %v2733_v43  ;;  %v4076_v43 = vld [vmem:[%s4468_s6 + $0x10] sm:$0xff] }
 0xc0b   : > { %2903 = vrot.lane.b32.xlu1 %v4586_v58, %s4256_s29  ;;  %v2750_v58 = vmul.f32 %v4050_v27, %v4998_v3  ;;  %v3914_v3 = vld [vmem:[#allocation7 + $0x38] sm:$0xff]  }
 0xc0d   : > { %v2758_v57 = vpack.c.bf16 %v2751_v49, %v2750_v58 }
 0xc4c   : > { %v2738_v60 = vpop.xlane.xlu0 %2737 }
 0xc4e   : > { %v2741_v44 = vpop.xlane.xlu1 %2740 }
 0xc4f   : > { %4051 = vrcp.f32 %v2741_v44 }
 0xc50   : > { %v2732_v16 = vpop.xlane.xlu0 %2731  ;;  %4053 = vrcp.f32 %v2738_v60  ;;  %v4077_v60 = vld [vmem:[%s4468_s6 + $0x8] sm:$0xff] }
 0xc51   : > { %4055 = vrcp.f32 %v2732_v16 }
 0xc52   : > { %v2810_v54 = vpop.permute.xlu1 %2809 }
 0xc53   : > { %3741 = vmatpush3.bf16.msra.mxu1 %v2810_v54 }
 0xc54   : > { %v2763_v53 = vpop.permute.xlu0 %2762  ;;  %3752 = vmatprep.subr.bf16.mxu1 %v4252_v40 }
 0xc55   : > { %3735 = vmatpush3.bf16.msra.mxu0 %v2763_v53 }
 0xc56   : > { %3743 = vmatmul.mubr.msk.bf16.vlgmr.msra.gmra.mrb[84].mxu1 %vm918_vm2, %v2759_v50  ;;  %3746 = vmatprep.subr.bf16.mxu0 %v4252_v40  ;;  %v2857_v24 = vpop.permute.xlu1 %2856  ;;  %v4080_v50 = vld [vmem:[%s4468_s6 + $0x20] sm:$0xff] }
 0xc57   : > { %3754 = vmatprep.mubr.msk.bf16.mxu1 %vm4253_vm0, %v4252_v40 }
 0xc58   : > { %3737 = vmatmul.mubr.msk.bf16.vlgmr.msra.gmra.mrb[60].mxu0 %vm918_vm2, %v2758_v57 }
 0xc59   : > { %3747 = vmatpush3.bf16.msra.mxu0 %v2857_v24  ;;  %3748 = vmatprep.mubr.msk.bf16.mxu0 %vm4253_vm0, %v4252_v40  ;;  %v4052_v20 = vpop.eup %4051 }
 0xc5a   : > { %v4054_v59 = vpop.eup %4053  ;;  %v2757_v38 = vmul.f32 %v4052_v20, %v4040_v14  ;;  %3758 = vmatprep.subr.bf16.mxu0 %v3913_v55  ;;  %v5041_v14 = vld [vmem:[%s5144_s4] sm:$0xff] }
 0xc5b   : > { %v2756_v30 = vmul.f32 %v4054_v59, %v4036_v22  ;;  %v4056_v8 = vpop.eup %4055  ;;  %v3058_v28 = vrot.slane %v5041_v14, %v3057_v2 }
 0xc5c   : > { %v2754_v5 = vmul.f32 %v4056_v8, %v5006_v23 }
 0xc5d   : > { %v2761_v34 = vpack.c.bf16 %v2757_v38, %v2756_v30  ;;  %v4082_v38 = vld [vmem:[%s4468_s6 + $0x30] sm:$0xff] }
 0xc87   : > { %v2735_v63 = vpop.xlane.xlu1 %2734 }
 0xc88   : > { %4057 = vrcp.f32 %v2735_v63  ;;  %v4081_v63 = vld [vmem:[%s4468_s6 + $0x28] sm:$0xff] }
 0xc8b   : > { %v2904_v61 = vpop.permute.xlu1 %2903 }
 0xc8c   : > { %3753 = vmatpush3.bf16.msra.mxu1 %v2904_v61  ;;  %v4083_v61 = vld [vmem:[%s4468_s6 + $0x38] sm:$0xff]  ;;  %s5092_s6 = scalar_lea.hbm %s5145_s5, %s3405_s14 }
 0xc8f   : > { %3755 = vmatmul.mubr.msk.bf16.vlgmr.msra.gmra.mrb[88].mxu1 %vm918_vm2, %v2761_v34 }
 0xc92   : > { %v4058_v25 = vpop.eup %4057 }
 0xc93   : > { %v2755_v10 = vmul.f32 %v4058_v25, %v4042_v39 }
 0xc95   : > { %v2760_v40 = vpack.c.bf16 %v2755_v10, %v2754_v5 }
 0xc97   : > { %3749 = vmatmul.mubr.msk.bf16.vlgmr.msra.gmra.mrb[64].mxu0 %vm918_vm2, %v2760_v40 }
 0xc98   : > { %3759 = vmatpush3.bf16.msra.mxu0 %v3913_v55 }
 0xc99   : > { %3760 = vmatprep.subr.bf16.mxu0 %v3914_v3 }
 0xc9c   : > { %3761 = vmatpush3.bf16.msra.mxu0 %v3914_v3 }
 0xd29   : > { %v2849_v4 = vpop.f32.mrb[84].mxu1 }
 0xd2a   : > { %v3744_v19 = vpop.f32.mrb[85].mxu1 }
 0xd2b   : > { %v2802_v31 = vpop.f32.mrb[60].mxu0  ;;  %v2852_v21 = vpop.f32.mrb[86].mxu1 }
 0xd2c   : > { %v2951_v45 = vpack.c.bf16 %v2852_v21, %v2849_v4  ;;  %v3738_v26 = vpop.f32.mrb[61].mxu0  ;;  %v3745_v48 = vpop.f32.mrb[87].mxu1 }
 0xd2d   : > { %v2805_v51 = vpop.f32.mrb[62].mxu0 }
 0xd2e   : > { %v2950_v56 = vpack.c.bf16 %v2805_v51, %v2802_v31  ;;  %v3739_v6 = vpop.f32.mrb[63].mxu0 }
 0xd30   : > { %3762 = vmatprep.mubr.msk.bf16.mxu0 %vm729_vm1, %v2950_v56 }
 0xd31   : > { %3763 = vmatmul.mubr.msk.bf16.vlgmr.msra.gmra.mrb[40].mxu0 %vm729_vm1, %v2951_v45 }
 0xd62   : > { %v2943_v62 = vpop.f32.mrb[88].mxu1 }
 0xd63   : > { %v3756_v1 = vpop.f32.mrb[89].mxu1 }
 0xd64   : > { %v2946_v18 = vpop.f32.mrb[90].mxu1 }
 0xd65   : > { %v2953_v32 = vpack.c.bf16 %v2946_v18, %v2943_v62  ;;  %v3757_v0 = vpop.f32.mrb[91].mxu1 }
 0xd6a   : > { %v2896_v41 = vpop.f32.mrb[64].mxu0 }
 0xd6b   : > { %v3750_v11 = vpop.f32.mrb[65].mxu0 }
 0xd6c   : > { %v2899_v9 = vpop.f32.mrb[66].mxu0 }
 0xd6d   : > { %v2952_v22 = vpack.c.bf16 %v2899_v9, %v2896_v41  ;;  %v3751_v23 = vpop.f32.mrb[67].mxu0 }
 0xd6f   : > { %3766 = vmatprep.mubr.msk.bf16.mxu0 %vm729_vm1, %v2952_v22 }
 0xd70   : > { %3767 = vmatmul.mubr.msk.bf16.gmra.mrb[44].mxu0 %vm729_vm1, %v2953_v32 }
 0xe04   : > { %v3764_v29 = vpop.f32.mrb[40].mxu0 }
 0xe05   : > { %v3061_v12 = vadd.f32 %v3764_v29, %v3058_v28  ;;  %v3016_v36 = vpop.f32.mrb[41].mxu0 }
 0xe06   : > { %v3765_v39 = vpop.f32.mrb[42].mxu0  ;;  %v3059_v47 = vadd.f32 %v3058_v28, %v3016_v36 }
 0xe07   : > { %v3069_v15 = vadd.f32 %v4076_v43, %v3061_v12  ;;  %v3019_v33 = vpop.f32.mrb[43].mxu0  ;;  %v3062_v46 = vadd.f32 %v3765_v39, %v3058_v28 }
 0xe08   : > { %v3060_v37 = vadd.f32 %v3058_v28, %v3019_v33  ;;  %v3067_v44 = vadd.f32 %v4078_v35, %v3059_v47 }
 0xe09   : > { %3079 = vadd.xlane.f32.xlu0 %v3069_v15  ;;  %v3070_v16 = vadd.f32 %v4079_v17, %v3062_v46 }
 0xe0a   : > { %v3068_v42 = vadd.f32 %v4077_v60, %v3060_v37 }
 0xe0c   : > { %3077 = vadd.xlane.f32.xlu1 %v3068_v42 }
 0xe0d   : > { %3075 = vadd.xlane.f32.xlu0 %v3067_v44 }
 0xe11   : > { %3081 = vadd.xlane.f32.xlu0 %v3070_v16 }
 0xe43   : > { %v3768_v27 = vpop.f32.mrb[44].mxu0 }
 0xe44   : > { %v3032_v49 = vpop.f32.mrb[45].mxu0  ;;  %v3065_v53 = vadd.f32 %v3768_v27, %v3058_v28  ;;  %v3166_v27 = vrot.slane %v5041_v14, %v446_v7 }
 0xe45   : > { %v3063_v52 = vadd.f32 %v3058_v28, %v3032_v49  ;;  %v3769_v54 = vpop.f32.mrb[46].mxu0 }
 0xe46   : > { %v3035_v58 = vpop.f32.mrb[47].mxu0  ;;  %v3066_v20 = vadd.f32 %v3769_v54, %v3058_v28  ;;  %v3073_v30 = vadd.f32 %v4082_v38, %v3065_v53 }
 0xe47   : > { %v3071_v57 = vadd.f32 %v4080_v50, %v3063_v52  ;;  %v3064_v24 = vadd.f32 %v3058_v28, %v3035_v58 }
 0xe48   : > { %v3074_v34 = vadd.f32 %v4083_v61, %v3066_v20 }
 0xe49   : > { %v3072_v59 = vadd.f32 %v4081_v63, %v3064_v24  ;;  %3083 = vadd.xlane.f32.xlu0 %v3071_v57 }
 0xe4b   : > { %3085 = vadd.xlane.f32.xlu1 %v3072_v59 }
 0xe4d   : > { %3087 = vadd.xlane.f32.xlu0 %v3073_v30 }
 0xe4f   : > { %3089 = vadd.xlane.f32.xlu1 %v3074_v34 }
 0xe96   : > { %v3080_v8 = vpop.xlane.xlu0 %3079 }
 0xe97   : > { %v3093_v40 = vmul.f32 0.0078125, %v3080_v8 }
 0xe99   : > { %v3078_v25 = vpop.xlane.xlu1 %3077  ;;  %v3101_v21 = vsub.f32 %v3069_v15, %v3093_v40 }
 0xe9a   : > { %v3092_v5 = vmul.f32 0.0078125, %v3078_v25  ;;  %v3076_v10 = vpop.xlane.xlu0 %3075 }
 0xe9b   : > { %v3091_v55 = vmul.f32 0.0078125, %v3076_v10  ;;  %v3109_v51 = vmul.f32 %v3101_v21, %v3101_v21 }
 0xe9c   : > { %v3100_v3 = vsub.f32 %v3068_v42, %v3092_v5 }
 0xe9d   : > { %v3099_v4 = vsub.f32 %v3067_v44, %v3091_v55 }
 0xe9e   : > { %v3082_v19 = vpop.xlane.xlu0 %3081  ;;  %v3108_v31 = vmul.f32 %v3100_v3, %v3100_v3 }
 0xe9f   : > { %v3094_v45 = vmul.f32 0.0078125, %v3082_v19  ;;  %v3107_v26 = vmul.f32 %v3099_v4, %v3099_v4 }
 0xea0   : > { %3117 = vadd.xlane.f32.xlu1 %v3108_v31 }
 0xea1   : > { %v3102_v48 = vsub.f32 %v3070_v16, %v3094_v45  ;;  %3115 = vadd.xlane.f32.xlu0 %v3107_v26  ;;  %v3177_v16 = vsub.s32 3, %v4519_v13 }
 0xea3   : > { %v3110_v56 = vmul.f32 %v3102_v48, %v3102_v48  ;;  %v3178_v54 = vrot.slane %v5041_v14, %v3177_v16 }
 0xea5   : > { %3119 = vadd.xlane.f32.xlu0 %v3109_v51  ;;  %3121 = vadd.xlane.f32.xlu1 %v3110_v56 }
 0xed6   : > { %v3084_v6 = vpop.xlane.xlu0 %3083 }
 0xed7   : > { %v3095_v62 = vmul.f32 0.0078125, %v3084_v6 }
 0xed8   : > { %v3086_v1 = vpop.xlane.xlu1 %3085 }
 0xed9   : > { %v5052_v18 = vsub.f32 %v3071_v57, %v3095_v62  ;;  %v3096_v32 = vmul.f32 0.0078125, %v3086_v1 }
 0xeda   : > { %v3088_v0 = vpop.xlane.xlu0 %3087 }
 0xedb   : > { %v5054_v41 = vsub.f32 %v3072_v59, %v3096_v32  ;;  %v3097_v11 = vmul.f32 0.0078125, %v3088_v0  ;;  %v3111_v9 = vmul.f32 %v5052_v18, %v5052_v18 }
 0xedc   : > { %v3090_v22 = vpop.xlane.xlu1 %3089 }
 0xedd   : > { %v5058_v23 = vsub.f32 %v3073_v30, %v3097_v11  ;;  %v3098_v2 = vmul.f32 0.0078125, %v3090_v22  ;;  %3123 = vadd.xlane.f32.xlu0 %v3111_v9  ;;  %v3112_v28 = vmul.f32 %v5054_v41, %v5054_v41 }
 0xedf   : > { %v5062_v29 = vsub.f32 %v3074_v34, %v3098_v2  ;;  %3125 = vadd.xlane.f32.xlu1 %v3112_v28  ;;  %v3113_v12 = vmul.f32 %v5058_v23, %v5058_v23 }
 0xee1   : > { %3127 = vadd.xlane.f32.xlu0 %v3113_v12  ;;  %v3114_v36 = vmul.f32 %v5062_v29, %v5062_v29 }
 0xee3   : > { %3129 = vadd.xlane.f32.xlu1 %v3114_v36 }
 0xf2d   : > { %v3118_v39 = vpop.xlane.xlu1 %3117 }
 0xf2e   : > { %v3132_v43 = vmul.f32 0.0078125, %v3118_v39  ;;  %v3116_v15 = vpop.xlane.xlu0 %3115 }
 0xf2f   : > { %v3131_v47 = vmul.f32 0.0078125, %v3116_v15 }
 0xf30   : > { %v3140_v33 = vadd.f32 1e-06, %v3132_v43 }
 0xf31   : > { %v3139_v37 = vadd.f32 1e-06, %v3131_v47 }
 0xf32   : > { %4059 = vrsqrt.f32 %v3140_v33  ;;  %v3120_v60 = vpop.xlane.xlu0 %3119  ;;  %v3122_v42 = vpop.xlane.xlu1 %3121 }
 0xf33   : > { %4061 = vrsqrt.f32 %v3139_v37  ;;  %v3133_v35 = vmul.f32 0.0078125, %v3120_v60  ;;  %v3134_v44 = vmul.f32 0.0078125, %v3122_v42 }
 0xf35   : > { %v3141_v46 = vadd.f32 1e-06, %v3133_v35  ;;  %v3142_v17 = vadd.f32 1e-06, %v3134_v44 }
 0xf37   : > { %4063 = vrsqrt.f32 %v3141_v46 }
 0xf38   : > { %4065 = vrsqrt.f32 %v3142_v17 }
 0xf3c   : > { %v4060_v49 = vpop.eup %4059 }
 0xf3d   : > { %v4062_v52 = vpop.eup %4061  ;;  %v3156_v58 = vmul.f32 %v4060_v49, %v3100_v3 }
 0xf3e   : > { %v3155_v53 = vmul.f32 %v4062_v52, %v3099_v4 }
 0xf3f   : > { %v3168_v50 = vmul.f32 %v3166_v27, %v3156_v58 }
 0xf40   : > { %v3167_v57 = vmul.f32 %v3166_v27, %v3155_v53 }
 0xf41   : > { %v4064_v24 = vpop.eup %4063  ;;  %v3180_v20 = vadd.f32 %v3178_v54, %v3168_v50 }
 0xf42   : > { %v4066_v63 = vpop.eup %4065  ;;  %v3179_v59 = vadd.f32 %v3178_v54, %v3167_v57  ;;  %v3157_v38 = vmul.f32 %v4064_v24, %v3101_v21 }
 0xf43   : > { %3188 = vst [vmem:[%s5075_s11 + $0x8] sm:$0xff] %v3180_v20  ;;  %v3158_v13 = vmul.f32 %v4066_v63, %v3102_v48 }
 0xf44   : > { %3187 = vst [vmem:[%s5075_s11] sm:$0xff] %v3179_v59  ;;  %v3169_v7 = vmul.f32 %v3166_v27, %v3157_v38 }
 0xf45   : > { %v3170_v14 = vmul.f32 %v3166_v27, %v3158_v13 }
 0xf46   : > { %v3181_v30 = vadd.f32 %v3178_v54, %v3169_v7 }
 0xf47   : > { %v3182_v61 = vadd.f32 %v3178_v54, %v3170_v14 }
 0xf48   : > { %3189 = vst [vmem:[%s5075_s11 + $0x10] sm:$0xff] %v3181_v30 }
 0xf49   : > { %3190 = vst [vmem:[%s5075_s11 + $0x18] sm:$0xff] %v3182_v61 }
 0xf6a   : > { %v3124_v34 = vpop.xlane.xlu0 %3123 }
 0xf6b   : > { %v3135_v8 = vmul.f32 0.0078125, %v3124_v34 }
 0xf6c   : > { %v3126_v25 = vpop.xlane.xlu1 %3125 }
 0xf6d   : > { %v3143_v5 = vadd.f32 1e-06, %v3135_v8  ;;  %v3136_v10 = vmul.f32 0.0078125, %v3126_v25 }
 0xf6e   : > { %v3128_v40 = vpop.xlane.xlu0 %3127 }
 0xf6f   : > { %4067 = vrsqrt.f32 %v3143_v5  ;;  %v3144_v55 = vadd.f32 1e-06, %v3136_v10  ;;  %v3137_v3 = vmul.f32 0.0078125, %v3128_v40 }
 0xf70   : > { %v3130_v4 = vpop.xlane.xlu1 %3129 }
 0xf71   : > { %4069 = vrsqrt.f32 %v3144_v55  ;;  %v3145_v19 = vadd.f32 1e-06, %v3137_v3  ;;  %v3138_v31 = vmul.f32 0.0078125, %v3130_v4 }
 0xf73   : > { %4071 = vrsqrt.f32 %v3145_v19  ;;  %v3146_v21 = vadd.f32 1e-06, %v3138_v31 }
 0xf75   : > { %4073 = vrsqrt.f32 %v3146_v21 }
 0xf79   : > { %v4068_v45 = vpop.eup %4067 }
 0xf7a   : > { %v3159_v26 = vmul.f32 %v4068_v45, %v5052_v18 }
 0xf7b   : > { %v4070_v48 = vpop.eup %4069 }
 0xf7c   : > { %v3171_v51 = vmul.f32 %v3166_v27, %v3159_v26  ;;  %v3160_v56 = vmul.f32 %v4070_v48, %v5054_v41 }
 0xf7d   : > { %v4072_v6 = vpop.eup %4071 }
 0xf7e   : > { %v3183_v62 = vadd.f32 %v3178_v54, %v3171_v51  ;;  %v3172_v1 = vmul.f32 %v3166_v27, %v3160_v56  ;;  %v3161_v32 = vmul.f32 %v4072_v6, %v5058_v23 }
 0xf7f   : > { %v4074_v0 = vpop.eup %4073 }
 0xf80   : > { %3191 = vst [vmem:[%s5075_s11 + $0x20] sm:$0xff] %v3183_v62  ;;  %v3184_v11 = vadd.f32 %v3178_v54, %v3172_v1  ;;  %v3173_v9 = vmul.f32 %v3166_v27, %v3161_v32  ;;  %v3162_v22 = vmul.f32 %v4074_v0, %v5062_v29 }
 0xf82   : > { %3192 = vst [vmem:[%s5075_s11 + $0x28] sm:$0xff] %v3184_v11  ;;  %v3185_v18 = vadd.f32 %v3178_v54, %v3173_v9  ;;  %v3174_v41 = vmul.f32 %v3166_v27, %v3162_v22 }
 0xf84   : > { %3193 = vst [vmem:[%s5075_s11 + $0x30] sm:$0xff] %v3185_v18  ;;  %v3186_v23 = vadd.f32 %v3178_v54, %v3174_v41 }
 0xf86   : > { %3194 = vst [vmem:[%s5075_s11 + $0x38] sm:$0xff] %v3186_v23 }
 0xf87   : > { %4183 = shalt.err (!%p4180_p2)
}
 0xf88   : > { %s4184_s12 = scalar_lea.hbm %s5092_s6, 1024  ;;  %s4188_s8 = scalar_lea.hbm %s5145_s5, 2048 }
 0xf89   : > { %p4185_p13 = scmp.ne.s32.totalorder %s5092_s6, %s4184_s12  ;;  %p4189_p4 = scmp.lt.u32.totalorder %s5092_s6, %s5145_s5 }
 0xf8a   : > { %p4190_p7 = scmp.lt.u32.totalorder %s4188_s8, %s4184_s12  ;;  %p4192_p11 = scmp.lt.u32.totalorder %s4184_s12, %s5092_s6 }
 0xf8b   : > { %p4186_p6 = pnand %p4185_p13, %p5159_p0 }
 0xf8c   : > { %p4191_p8 = por %p4190_p7, %p4189_p4 }
 0xf8d   : > { %p4187_p10 = pneg %p4186_p6 }
 0xf8e   : > { %p4193_p1 = por %p4192_p11, %p4191_p8 }
 0xf90   : > { %p4194_p3 = pnand %p4193_p1, %p4187_p10 }
 0xf92   : > { %4197 = shalt.err (!%p4194_p3)
}
 0xf93   : > { %s4258_s14 = smov 128   ;;  %s4259_s23 = smov 8  }
 0xf94   : > { %3804 = dma.vmem_to_hbm [thread:$0]  (%p5159_p0), %s5094_s15, 1024, %s5092_s6, %s3196_s24, %s4258_s14, %s4258_s14, %s4259_s23  }
 0xf95 PF: > { %s3225_s7 = sand.u32 1, %s4228_s18   ;;  %p5160_p5 = scmp.ne.s32.totalorder %s5150_s25, 0 }
 0xf96   : > { %p5161_p9 = scmp.ge.s32.totalorder %s4240_s21, 2  ;;  %s3226_s26 = scalar_lea.sflag [#allocation4], %s3225_s7 }
 0xf98   : > { %p3818_p12 = pnand %p5161_p9, %p5160_p5 }
 0xf9a   : > { %4223 = dma.done.wait (!%p3818_p12), %s3226_s26, 1024  }
 0xf9b   : > { %4225 = vsyncadd (!%p3818_p12), %s3226_s26, 4294966272  ;;  %p19_p2 = scmp.ge.s32.totalorder %s4400_s16, 4   ;;  %s5162_s18 = smov %s4232_s19 }
 0xf9c   : > { %s5163_s19 = smov %s4236_s20  ;;  %s5164_s20 = smov %s4409_s27 }
 0xf9d   : > { %s5165_s21 = smov %s4400_s16  ;;  %21 = sbr.rel (!%p19_p2) target bundleno = 6 (0x6), region = 93 }
 0xfa4   :  { %3231 = vsyncpa [#allocation3], 1 }
 0xfa5   :  { %3233 = vsyncpa [#allocation3 + $0x1], 1 }
 0xfa6   :  { %3234 = vsyncpa [#allocation6], 1 }
 0xfa7   :  { %3235 = vsyncpa [#allocation4], 1 }
 0xfa8   :  { %3237 = vsyncpa [#allocation4 + $0x1], 1 }

</bundles_post_ra>
